<compile_context>
chip_gen: v5e
topology: v5e:2x2
jax: 0.10.0
libtpu: 0.0.40
codegen_flags: <defaults>
</compile_context>

<pallas_src>
import functools

import jax
import jax.numpy as jnp
from jax import lax
from jax.experimental import pallas as pl
from jax.experimental.pallas import tpu as pltpu


# -----------------------------------------------------------------------------
# Fused kernel: im2col-matmul conv3x3 + folded BN + ReLU + conv1x1 (+ bilinear
# upsample via one Kronecker matmul).  One grid step per batch element.
# -----------------------------------------------------------------------------
def _seghead_kernel(p_ref, w3_ref, bn_s_ref, bn_b_ref, w1_ref, b1_ref, *rest,
                    upsample):
    if upsample:
        m_ref, o_ref = rest
    else:
        (o_ref,) = rest

    patches = p_ref[0]                                            # (K, H*W) bf16

    # 3x3 conv == a single MXU matmul: bf16 operands, f32 accumulation.
    fm = jnp.dot(w3_ref[...], patches,
                 preferred_element_type=jnp.float32)              # (Cmid, H*W)

    # Folded eval-mode BatchNorm + ReLU (f32 elementwise on the VPU).
    fm = jnp.maximum(fm * bn_s_ref[...] + bn_b_ref[...], 0.0)

    # 1x1 conv (+bias), again bf16 operands -> f32 accumulation.
    out = jnp.dot(w1_ref[...], fm.astype(jnp.bfloat16),
                  preferred_element_type=jnp.float32) + b1_ref[...]  # (Cout, H*W)

    if upsample:
        # Bilinear (align_corners=True) upsample: one f32 matmul against the
        # hoisted Kronecker interpolation matrix.  Output is already flat NCHW
        # and the store is lane-dense (Ho*Wo wide).
        out = jnp.dot(out, m_ref[...], preferred_element_type=jnp.float32)

    o_ref[0] = out.astype(o_ref.dtype)


def seghead_fused(patches, w3t, bn_scale, bn_shift, w1t, b1, interp_m,
                  out_dtype):
    N, K, HW = patches.shape
    Cmid = w3t.shape[0]
    Cout = w1t.shape[0]
    upsample = interp_m is not None
    HWo = interp_m.shape[1] if upsample else HW

    in_specs = [
        pl.BlockSpec((1, K, HW), lambda n: (n, 0, 0)),
        pl.BlockSpec((Cmid, K), lambda n: (0, 0)),
        pl.BlockSpec((Cmid, 1), lambda n: (0, 0)),
        pl.BlockSpec((Cmid, 1), lambda n: (0, 0)),
        pl.BlockSpec((Cout, Cmid), lambda n: (0, 0)),
        pl.BlockSpec((Cout, 1), lambda n: (0, 0)),
    ]
    args = [patches, w3t, bn_scale, bn_shift, w1t, b1]
    if upsample:
        in_specs.append(pl.BlockSpec((HW, HWo), lambda n: (0, 0)))
        args.append(interp_m)

    return pl.pallas_call(
        functools.partial(_seghead_kernel, upsample=upsample),
        out_shape=jax.ShapeDtypeStruct((N, Cout, HWo), out_dtype),
        grid=(N,),
        in_specs=in_specs,
        out_specs=pl.BlockSpec((1, Cout, HWo), lambda n: (n, 0, 0)),
        compiler_params=pltpu.CompilerParams(
            dimension_semantics=("parallel",)),
    )(*args)


# -----------------------------------------------------------------------------
# Parameter setup, interpolation matrices, forward pass, pure-XLA reference.
# -----------------------------------------------------------------------------
def interp_matrix_1d(n_in, n_out):
    """align_corners=True bilinear interpolation matrix of shape (n_out, n_in)."""
    if n_out > 1 and n_in > 1:
        s = jnp.arange(n_out, dtype=jnp.float32) * (n_in - 1) / (n_out - 1)
    else:
        s = jnp.zeros((n_out,), jnp.float32)
    i0 = jnp.clip(jnp.floor(s), 0, n_in - 1).astype(jnp.int32)
    i1 = jnp.clip(i0 + 1, 0, n_in - 1)
    frac = s - i0.astype(jnp.float32)
    return (jax.nn.one_hot(i0, n_in, dtype=jnp.float32) * (1.0 - frac)[:, None]
            + jax.nn.one_hot(i1, n_in, dtype=jnp.float32) * frac[:, None])


def init_params(key, in_planes, out_planes, H, W, scale, c_mid=64, eps=1e-5):
    ks = jax.random.split(key, 7)
    # PyTorch parameter layouts: conv3x3 (Cmid, Cin, 3, 3) no bias, BN(Cmid),
    # conv1x1 (Cout, Cmid) + bias.
    w3_oihw = jax.random.normal(ks[0], (c_mid, in_planes, 3, 3), jnp.float32) * 0.1
    gamma = jax.random.uniform(ks[1], (c_mid,), jnp.float32, 0.5, 1.5)
    beta = jax.random.normal(ks[2], (c_mid,), jnp.float32) * 0.1
    run_mean = jax.random.normal(ks[3], (c_mid,), jnp.float32) * 0.1
    run_var = jax.random.uniform(ks[4], (c_mid,), jnp.float32, 0.5, 1.5)
    w1_oi = jax.random.normal(ks[5], (out_planes, c_mid), jnp.float32) * 0.1
    b1 = jax.random.normal(ks[6], (out_planes,), jnp.float32) * 0.1

    # Fold eval-mode BatchNorm into a per-channel scale/shift.
    bn_scale = gamma / jnp.sqrt(run_var + eps)
    bn_shift = beta - run_mean * bn_scale

    # conv3x3 weight packed for the im2col matmul: (Cmid, 9*Cin_p) with
    # column index (dy*3 + dx)*Cin_p + cin; Cin zero-padded to a sublane multiple.
    cin_p = ((in_planes + 7) // 8) * 8
    w3t = jnp.transpose(w3_oihw, (0, 2, 3, 1))                   # (Cmid, 3, 3, Cin)
    w3t = jnp.pad(w3t, ((0, 0), (0, 0), (0, 0), (0, cin_p - in_planes)))
    w3t = w3t.reshape(c_mid, 9 * cin_p)

    params = {
        "w3t": w3t.astype(jnp.bfloat16),                         # (Cmid, 9*Cin_p)
        "bn_scale": bn_scale.reshape(c_mid, 1),
        "bn_shift": bn_shift.reshape(c_mid, 1),
        "w1t": w1_oi.astype(jnp.bfloat16),                       # (Cout, Cmid)
        "b1": b1.reshape(out_planes, 1),
    }

    if scale > 1:
        # Hoisted Kronecker interpolation matrix (depends only on H, W, scale):
        # M[h*W+w, p*Wo+q] = A[p,h] * B[q,w], so flat_out = flat_in @ M.
        Ho, Wo = H * scale, W * scale
        A = interp_matrix_1d(H, Ho)                              # (Ho, H)
        B = interp_matrix_1d(W, Wo)                              # (Wo, W)
        params["interp_m"] = jnp.einsum("ph,qw->hwpq", A, B).reshape(
            H * W, Ho * Wo)                                      # (H*W, Ho*Wo) f32

    raw = {"w3_oihw": w3_oihw, "bn_scale": bn_scale, "bn_shift": bn_shift,
           "w1_oi": w1_oi, "b1": b1}
    return params, raw


def i2i_seg_head_forward(x_nchw, params, scale):
    """x: (N, Cin, H, W) float32 NCHW (PyTorch convention).  Returns NCHW."""
    N, Cin, H, W = x_nchw.shape
    w3t = params["w3t"]
    K = w3t.shape[1]
    cin_p = K // 9
    Cout = params["w1t"].shape[0]
    Ho, Wo = H * scale, W * scale

    # Wrapper-side im2col: the 9 taps are stacked along the contraction axis so
    # the kernel does a single big matmul.
    x_pad = jnp.pad(x_nchw, ((0, 0), (0, cin_p - Cin), (1, 1), (1, 1)))
    wins = [x_pad[:, :, dy:dy + H, dx:dx + W]
            for dy in range(3) for dx in range(3)]
    patches = (jnp.stack(wins, axis=1)
               .reshape(N, K, H * W)
               .astype(jnp.bfloat16))

    interp_m = params.get("interp_m") if scale > 1 else None
    if interp_m is not None:
        assert interp_m.shape == (H * W, Ho * Wo)

    out = seghead_fused(patches, w3t, params["bn_scale"], params["bn_shift"],
                        params["w1t"], params["b1"], interp_m, x_nchw.dtype)
    return out.reshape(N, Cout, Ho, Wo)      # free metadata-only reshape


def reference_forward(x_nchw, raw, scale, matmul_dtype=jnp.float32):
    """Pure-XLA reference for the PyTorch module (eval-mode BN folded)."""
    x = jnp.transpose(x_nchw, (0, 2, 3, 1))                      # NHWC
    w_hwio = jnp.transpose(raw["w3_oihw"], (2, 3, 1, 0))
    fm = lax.conv_general_dilated(
        x.astype(matmul_dtype), w_hwio.astype(matmul_dtype),
        window_strides=(1, 1), padding=[(1, 1), (1, 1)],
        dimension_numbers=("NHWC", "HWIO", "NHWC"),
        preferred_element_type=jnp.float32)
    fm = jnp.maximum(fm * raw["bn_scale"] + raw["bn_shift"], 0.0)
    out = jnp.einsum("nhwc,oc->nhwo", fm.astype(matmul_dtype),
                     raw["w1_oi"].astype(matmul_dtype),
                     preferred_element_type=jnp.float32) + raw["b1"]
    if scale > 1:
        _, H, W, _ = out.shape
        A = interp_matrix_1d(H, H * scale)
        B = interp_matrix_1d(W, W * scale)
        out = jnp.einsum("ph,nhwc->npwc", A, out)
        out = jnp.einsum("qw,npwc->npqc", B, out)
    return jnp.transpose(out, (0, 3, 1, 2))                      # NCHW


if __name__ == "__main__":
    N, Cin, H, W = 2, 4, 16, 16
    Cout, SCALE = 8, 2

    key = jax.random.PRNGKey(0)
    k_param, k_x = jax.random.split(key)
    params, raw = init_params(k_param, Cin, Cout, H, W, SCALE, c_mid=64)
    x = jax.random.normal(k_x, (N, Cin, H, W), jnp.float32)

    out = jax.block_until_ready(i2i_seg_head_forward(x, params, SCALE))
    assert out.shape == (N, Cout, H * SCALE, W * SCALE), out.shape

    # Apples-to-apples check: reference using the same bf16 MXU operands / f32
    # accumulation (differences are accumulation-order + double-rounding only).
    ref_bf16 = jax.block_until_ready(reference_forward(x, raw, SCALE, jnp.bfloat16))
    err_bf16 = float(jnp.max(jnp.abs(out - ref_bf16)))
    assert err_bf16 < 2e-2, f"bf16-matched reference mismatch: {err_bf16}"

    # Sanity vs the full-f32 module math.  Tolerance derived for bf16 MXU
    # operands (|out| ~ O(1), two bf16 matmuls with f32 accumulation -> ~1e-2
    # worst-case absolute error), not an arbitrarily loose bound.
    ref_f32 = jax.block_until_ready(reference_forward(x, raw, SCALE, jnp.float32))
    err_f32 = float(jnp.max(jnp.abs(out - ref_f32)))
    assert err_f32 < 5e-2, f"f32 reference error too large: {err_f32}"

    print("KERNEL_OK")
</pallas_src>

<mosaic_0001>
module attributes {stable_mosaic.version = 11 : i64} {
  func.func @_seghead_kernel(%arg0: i32, %arg1: memref<1x72x256xbf16, #tpu.memory_space<vmem>>, %arg2: memref<64x72xbf16, #tpu.memory_space<vmem>>, %arg3: memref<64x1xf32, #tpu.memory_space<vmem>>, %arg4: memref<64x1xf32, #tpu.memory_space<vmem>>, %arg5: memref<8x64xbf16, #tpu.memory_space<vmem>>, %arg6: memref<8x1xf32, #tpu.memory_space<vmem>>, %arg7: memref<256x1024xf32, #tpu.memory_space<vmem>>, %arg8: memref<1x8x1024xf32, #tpu.memory_space<vmem>>) attributes {dimension_semantics = [#tpu.dimension_semantics<parallel>], iteration_bounds = array<i64: 2>, scalar_prefetch = 0 : i64, scratch_operands = 0 : i64, tpu.core_type = #tpu.core_type<tc>, window_params = [{transform_indices = @transform_0, window_bounds = array<i64: 1, 72, 256>}, {pipeline_mode = #tpu.pipeline_mode<synchronous>, transform_indices = @transform_1, window_bounds = array<i64: 64, 72>}, {pipeline_mode = #tpu.pipeline_mode<synchronous>, transform_indices = @transform_2, window_bounds = array<i64: 64, 1>}, {pipeline_mode = #tpu.pipeline_mode<synchronous>, transform_indices = @transform_3, window_bounds = array<i64: 64, 1>}, {pipeline_mode = #tpu.pipeline_mode<synchronous>, transform_indices = @transform_4, window_bounds = array<i64: 8, 64>}, {pipeline_mode = #tpu.pipeline_mode<synchronous>, transform_indices = @transform_5, window_bounds = array<i64: 8, 1>}, {pipeline_mode = #tpu.pipeline_mode<synchronous>, transform_indices = @transform_6, window_bounds = array<i64: 256, 1024>}, {transform_indices = @transform_7, window_bounds = array<i64: 1, 8, 1024>}]} {
    %c0 = arith.constant 0 : index
    %c0_0 = arith.constant 0 : index
    %c0_1 = arith.constant 0 : index
    %0 = vector.load %arg1[%c0, %c0_0, %c0_1] : memref<1x72x256xbf16, #tpu.memory_space<vmem>>, vector<1x72x256xbf16>
    %1 = vector.shape_cast %0 : vector<1x72x256xbf16> to vector<72x256xbf16>
    %c0_2 = arith.constant 0 : index
    %c0_3 = arith.constant 0 : index
    %2 = vector.load %arg2[%c0_2, %c0_3] : memref<64x72xbf16, #tpu.memory_space<vmem>>, vector<64x72xbf16>
    %cst = arith.constant dense<0.000000e+00> : vector<64x256xf32>
    %3 = tpu.matmul %2, %1, %cst {dimension_numbers = #tpu.dot_dimension_numbers<[1], [0], [0], [1], [0, 0, 1, 1], [], []>} : vector<64x72xbf16>, vector<72x256xbf16>, vector<64x256xf32> -> vector<64x256xf32>
    %c0_4 = arith.constant 0 : index
    %c0_5 = arith.constant 0 : index
    %4 = vector.load %arg3[%c0_4, %c0_5] : memref<64x1xf32, #tpu.memory_space<vmem>>, vector<64x1xf32>
    %5 = vector.broadcast %4 : vector<64x1xf32> to vector<64x256xf32>
    %6 = arith.mulf %3, %5 : vector<64x256xf32>
    %c0_6 = arith.constant 0 : index
    %c0_7 = arith.constant 0 : index
    %7 = vector.load %arg4[%c0_6, %c0_7] : memref<64x1xf32, #tpu.memory_space<vmem>>, vector<64x1xf32>
    %8 = vector.broadcast %7 : vector<64x1xf32> to vector<64x256xf32>
    %9 = arith.addf %6, %8 : vector<64x256xf32>
    %cst_8 = arith.constant 0.000000e+00 : f32
    %10 = vector.broadcast %cst_8 : f32 to vector<64x256xf32>
    %11 = arith.maximumf %9, %10 : vector<64x256xf32>
    %c0_9 = arith.constant 0 : index
    %c0_10 = arith.constant 0 : index
    %12 = vector.load %arg5[%c0_9, %c0_10] : memref<8x64xbf16, #tpu.memory_space<vmem>>, vector<8x64xbf16>
    %13 = arith.truncf %11 : vector<64x256xf32> to vector<64x256xbf16>
    %cst_11 = arith.constant dense<0.000000e+00> : vector<8x256xf32>
    %14 = tpu.matmul %12, %13, %cst_11 {dimension_numbers = #tpu.dot_dimension_numbers<[1], [0], [0], [1], [0, 0, 1, 1], [], []>} : vector<8x64xbf16>, vector<64x256xbf16>, vector<8x256xf32> -> vector<8x256xf32>
    %c0_12 = arith.constant 0 : index
    %c0_13 = arith.constant 0 : index
    %15 = vector.load %arg6[%c0_12, %c0_13] : memref<8x1xf32, #tpu.memory_space<vmem>>, vector<8x1xf32>
    %16 = vector.broadcast %15 : vector<8x1xf32> to vector<8x256xf32>
    %17 = arith.addf %14, %16 : vector<8x256xf32>
    %c0_14 = arith.constant 0 : index
    %c0_15 = arith.constant 0 : index
    %18 = vector.load %arg7[%c0_14, %c0_15] : memref<256x1024xf32, #tpu.memory_space<vmem>>, vector<256x1024xf32>
    %cst_16 = arith.constant dense<0.000000e+00> : vector<8x1024xf32>
    %19 = tpu.matmul %17, %18, %cst_16 {dimension_numbers = #tpu.dot_dimension_numbers<[1], [0], [0], [1], [0, 0, 1, 1], [], []>} : vector<8x256xf32>, vector<256x1024xf32>, vector<8x1024xf32> -> vector<8x1024xf32>
    %c0_17 = arith.constant 0 : index
    %c0_18 = arith.constant 0 : index
    %c0_19 = arith.constant 0 : index
    %20 = vector.load %arg8[%c0_17, %c0_18, %c0_19] : memref<1x8x1024xf32, #tpu.memory_space<vmem>>, vector<1x8x1024xf32>
    %21 = vector.shape_cast %20 : vector<1x8x1024xf32> to vector<8x1024xf32>
    %22 = vector.shape_cast %19 : vector<8x1024xf32> to vector<1x8x1024xf32>
    tpu.vector_store %arg8[%c0_17, %c0_18, %c0_19], %22 {strides = array<i32>} : memref<1x8x1024xf32, #tpu.memory_space<vmem>>, vector<1x8x1024xf32>,
    return
  }
  func.func @transform_0(%arg0: i32) -> (i32, i32, i32) {
    %c0_i32 = arith.constant 0 : i32
    %c0_i32_0 = arith.constant 0 : i32
    %c0_i32_1 = arith.constant 0 : i32
    return %arg0, %c0_i32, %c0_i32_0 : i32, i32, i32
  }
  func.func @transform_1(%arg0: i32) -> (i32, i32) {
    %c0_i32 = arith.constant 0 : i32
    %c0_i32_0 = arith.constant 0 : i32
    %c0_i32_1 = arith.constant 0 : i32
    return %c0_i32, %c0_i32_0 : i32, i32
  }
  func.func @transform_2(%arg0: i32) -> (i32, i32) {
    %c0_i32 = arith.constant 0 : i32
    %c0_i32_0 = arith.constant 0 : i32
    %c0_i32_1 = arith.constant 0 : i32
    return %c0_i32, %c0_i32_0 : i32, i32
  }
  func.func @transform_3(%arg0: i32) -> (i32, i32) {
    %c0_i32 = arith.constant 0 : i32
    %c0_i32_0 = arith.constant 0 : i32
    %c0_i32_1 = arith.constant 0 : i32
    return %c0_i32, %c0_i32_0 : i32, i32
  }
  func.func @transform_4(%arg0: i32) -> (i32, i32) {
    %c0_i32 = arith.constant 0 : i32
    %c0_i32_0 = arith.constant 0 : i32
    %c0_i32_1 = arith.constant 0 : i32
    return %c0_i32, %c0_i32_0 : i32, i32
  }
  func.func @transform_5(%arg0: i32) -> (i32, i32) {
    %c0_i32 = arith.constant 0 : i32
    %c0_i32_0 = arith.constant 0 : i32
    %c0_i32_1 = arith.constant 0 : i32
    return %c0_i32, %c0_i32_0 : i32, i32
  }
  func.func @transform_6(%arg0: i32) -> (i32, i32) {
    %c0_i32 = arith.constant 0 : i32
    %c0_i32_0 = arith.constant 0 : i32
    %c0_i32_1 = arith.constant 0 : i32
    return %c0_i32, %c0_i32_0 : i32, i32
  }
  func.func @transform_7(%arg0: i32) -> (i32, i32, i32) {
    %c0_i32 = arith.constant 0 : i32
    %c0_i32_0 = arith.constant 0 : i32
    %c0_i32_1 = arith.constant 0 : i32
    return %arg0, %c0_i32, %c0_i32_0 : i32, i32, i32
  }
}

</mosaic_0001>

<bundles_post_ra>
// kernel: tpu_custom_call.1
= control target key start
LH: loop header
LB: loop body
LE: loop exit
PB: predicated region body
PF: predicated region fallthrough
CT: control target
= control target key end

     0   :  { %s1962_s0 = inlined_call_operand.hbm [shape: bf16[2,72,256], index: 0, kind: input, shape index: {}]   ;;  %s1963_s1 = inlined_call_operand.vmem [shape: bf16[64,72], index: 1, kind: input, shape index: {}]   ;;  %s1964_s2 = inlined_call_operand.vmem [shape: f32[64,1], index: 2, kind: input, shape index: {}]   ;;  %s1965_s3 = inlined_call_operand.vmem [shape: f32[64,1], index: 3, kind: input, shape index: {}]   ;;  %s1966_s4 = inlined_call_operand.vmem [shape: bf16[8,64], index: 4, kind: input, shape index: {}]   ;;  %s1967_s5 = inlined_call_operand.vmem [shape: f32[8,1], index: 5, kind: input, shape index: {}]   ;;  %s1968_s6 = inlined_call_operand.hbm [shape: f32[256,1024], index: 6, kind: input, shape index: {}]   ;;  %s1969_s7 = inlined_call_operand.hbm [shape: f32[2,8,1024], index: 7, kind: output, shape index: {}]  }
   0x1   :  { %1971 = sst [smem:[#allocation13_spill]] %s1968_s6 }
   0x2   :  { %12 = vsyncpa [#allocation3], 0 }
   0x3   :  { %14 = vsyncpa [#allocation3 + $0x1], 0 }
   0x4   :  { %15 = vsyncpa [#allocation6], 0 }
   0x5   :  { %16 = vsyncpa [#allocation4], 0 }
   0x6   :  { %18 = vsyncpa [#allocation4 + $0x1], 0  ;;  %s1677_s24 = smov 0   ;;  %s1679_s25 = smov 0  }
   0x7   :  { %s1681_s26 = smov 0   ;;  %s1683_s27 = smov 0  }
   0x8 LB: > { %1972 = sst [smem:[#allocation11_spill]] %s1625_s26  ;;  %s1698_s28 = sadd.s32 4294967295, %s1629_s27   ;;  %s1629_s27 = sphi %s1683_s27, %s1985_s27   ;;  %s1625_s26 = sphi %s1681_s26, %s1982_s26   ;;  %s1621_s25 = sphi %s1679_s25, %s1984_s25   ;;  %s1617_s24 = sphi %s1677_s24, %s1983_s24  }
   0x9   : > { %s1347_s29 = sadd.s32 4294967294, %s1629_s27   ;;  %p44_p0 = scmp.ne.s32.totalorder %s1621_s25, %s1617_s24 }
   0xa   : > { %p45_p1 = scmp.eq.s32.totalorder %s1698_s28, 0  ;;  %p194_p2 = scmp.eq.s32.totalorder %s1698_s28, 1 }
   0xb   : > { %p200_p3 = scmp.eq.s32.totalorder %s1347_s29, 1  ;;  %p1348_p5 = scmp.ge.s32.totalorder %s1629_s27, 1 }
   0xc   : > { %p1707_p4 = por %p45_p1, %p44_p0  ;;  %p207_p7 = scmp.lt.s32.totalorder %s1629_s27, 3 }
   0xd   : > { %p1712_p6 = por %p200_p3, %p44_p0  ;;  %s1975_s6 = sld [smem:[#allocation13_spill]] }
   0xe   : > { %p1720_p8 = pnand %p1348_p5, %p207_p7  ;;  %s1631_s13 = smov [#allocation5]  }
   0xf   : > { %s235_s14 = sshll.u32 %s1631_s13, 4  ;;  %s1730_s15 = sadd.s32 1, %s1629_s27   ;;  %s236_s14 = int_to_ptr.vmem [resolvable:$true] %s235_s14 }
  0x10   : > { %p1442_p9 = pneg %p1720_p8  ;;  %s1632_s16 = smov 1024  }
  0x11   : > { %s1633_s17 = smov 64   ;;  %s28_s18 = ssub.s32 %s1629_s27, %s1730_s15 }
  0x12   : > { %p1443_p10 = pnand %p1442_p9, %p45_p1  ;;  %s31_s19 = sadd.s32 1, %s1625_s26 }
  0x13   : > { %s233_s11 = sshll.u32 %s1975_s6, 4  ;;  %p29_p12 = scmp.eq.s32.totalorder %s28_s18, 0  ;;  %s234_s11 = int_to_ptr.hbm [resolvable:$true] %s233_s11 }
  0x14   : > { %1445 = dma.hbm_to_vmem [thread:$0]  (!%p1443_p10), %s234_s11, 32768, %s236_s14, [#allocation6], %s1632_s16, %s1632_s16, %s1633_s17  }
  0x15   : > { %p38_p13 = scmp.ne.s32.totalorder %s1625_s26, %s1621_s25  ;;  %p39_p0 = scmp.eq.s32.totalorder %s1629_s27, 0 }
  0x16   : > { %p1455_p3 = scmp.lt.s32.totalorder %s1629_s27, 2  ;;  %s249_s22 = sand.u32 1, %s1625_s26  }
  0x17   : > { %s1740_s20 = scalar_select %p29_p12, %s1625_s26, %s31_s19  }
  0x18   : > { %p40_p5 = por %p39_p0, %p38_p13  ;;  %p1744_p7 = por %p194_p2, %p38_p13 }
  0x19   : > { %1977 = sst [smem:[#allocation12_spill]] %s1740_s20  ;;  %s1432_s23 = smul.u32 72, %s1629_s27 }
  0x1a   : > { %s1431_s29 = smul.u32 72, %s249_s22  ;;  %p1753_p9 = pnand %p1455_p3, %p40_p5 }
  0x1b   : > { %s258_s11 = scalar_lea.hbm %s1962_s0, %s1432_s23  ;;  %s250_s18 = scalar_lea.sflag [#allocation3], %s249_s22 }
  0x1c   : > { %s259_s14 = sshll.u32 %s258_s11, 4  ;;  %s253_s16 = scalar_lea.vmem [#allocation2], %s1431_s29  ;;  %s260_s14 = int_to_ptr.hbm [resolvable:$true] %s259_s14 }
  0x1d   : > { %s261_s17 = sshll.u32 %s253_s16, 4  ;;  %s1529_s19 = sshra.s32 %s260_s14, 4  ;;  %s262_s17 = int_to_ptr.vmem [resolvable:$true] %s261_s17  ;;  %s1530_s19 = int_to_ptr.hbm [resolvable:$true] %s1529_s19 }
  0x1e   : > { %s1531_s6 = scalar_lea.hbm %s1530_s19, 72  ;;  %p1533_p10 = pneg %p1753_p9 }
  0x1f   : > { %p1532_p2 = scmp.ne.s32.totalorder %s1530_s19, %s1531_s6  ;;  %s1536_s10 = scalar_lea.hbm %s1962_s0, 144 }
  0x20   : > { %p1537_p0 = scmp.lt.s32.totalorder %s1530_s19, %s1962_s0  ;;  %p1538_p3 = scmp.lt.s32.totalorder %s1536_s10, %s1531_s6 }
  0x21   : > { %p1534_p12 = pnand %p1533_p10, %p1532_p2 }
  0x22   : > { %p1539_p5 = por %p1538_p3, %p1537_p0 }
  0x23   : > { %p1535_p13 = pneg %p1534_p12 }
  0x25   : > { %p1540_p11 = pnand %p1539_p5, %p1535_p13 }
  0x27   : > { %1543 = shalt.err (!%p1540_p11)
}
  0x28   : > { %s1634_s22 = smov 128   ;;  %s1635_s29 = smov 8  }
  0x29   : > { %1449 = dma.hbm_to_vmem [thread:$0]  (!%p1753_p9), %s260_s14, 1152, %s262_s17, %s250_s18, %s1634_s22, %s1634_s22, %s1635_s29  }
  0x2a   : > { %273 = sbr.rel (%p1720_p8) target bundleno = 651 (0x28b), region = 48  ;;  %s1770_s11 = sand.u32 (!%p1720_p8), 1, %s1621_s25  }
  0x2b   : > { %s1433_s26 = smul.u32 (!%p1720_p8), 72, %s1770_s11  ;;  %s276_s20 = scalar_lea.sflag (!%p1720_p8), [#allocation3], %s1770_s11 }
  0x2d   : > { %s1774_s6 = scalar_lea.vmem (!%p1720_p8), [#allocation2], %s1433_s26 }
  0x2f   : > { %1604 = dma.done.wait (%p1707_p4), %s276_s20, 1152  }
  0x30   : > { %1606 = vsyncadd (%p1707_p4), %s276_s20, 4294966144 }
  0x31   : > { %1608 = dma.done.wait (%p45_p1), [#allocation6], 32768  }
  0x32   : > { %1610 = vsyncadd (%p45_p1), [#allocation6], 4294934528  ;;  %v1636_v0 = vmov 0   ;;  %v483_v1 = vld [vmem:[%s1964_s2 + $0x30] sm:$0xff]  ;;  %v325_v2 = vld [vmem:[%s1774_s6 + $0x40] sm:$0xff]  ;;  %vm412_vm0 = vcmask 1043456  }
  0x33   : > { %1496 = vset.pattern.permute.xlu0 %v1636_v0  ;;  %1497 = vset.pattern.permute.xlu1 %v1636_v0  ;;  %v379_v3 = vunpack.c.l.b16 %v325_v2  ;;  %v380_v4 = vunpack.c.h.b16 %v325_v2  ;;  %v1397_v5 = vld [vmem:[%s1774_s6 + $0x30] sm:$0xf]  ;;  %v1425_v9 = vld [vmem:[%s1774_s6 + $0x34] sm:$0xf0]  ;;  %v1424_v10 = vld [vmem:[%s1774_s6 + $0x34] sm:$0xf] }
  0x34   : > { %1498 = vset.pattern.permute.xlu2 %v1636_v0  ;;  %517 = vperm.xlu0 %1496, %v483_v1   ;;  %v547_v6 = vld [vmem:[%s1965_s3 + $0x30] sm:$0xff]  ;;  %v1399_v11 = vld [vmem:[%s1774_s6 + $0x38] sm:$0xf0]  ;;  %v1398_v14 = vor.u32 %v1425_v9, %v1397_v5  ;;  %v1389_v17 = vld [vmem:[%s1774_s6 + $0x20] sm:$0xf]  ;;  %vm399_vm1 = vcmask 588800  }
  0x35   : > { %v389_v7 = vpack.c.b16 %v379_v3, %v379_v3  ;;  %v390_v8 = vpack.c.b16 %v380_v4, %v380_v4  ;;  %581 = vperm.xlu1 %1497, %v547_v6   ;;  %v1402_v15 = vor.u32 %v1424_v10, %v1399_v11  ;;  %v484_v16 = vld [vmem:[%s1964_s2 + $0x38] sm:$0xff]  ;;  %v1423_v18 = vld [vmem:[%s1774_s6 + $0x24] sm:$0xf0]  ;;  %v1422_v19 = vld [vmem:[%s1774_s6 + $0x24] sm:$0xf]  ;;  %vm636_vm2 = vcmask 523264  }
  0x36   : > { %v1391_v20 = vld [vmem:[%s1774_s6 + $0x28] sm:$0xf0]  ;;  %v548_v21 = vld [vmem:[%s1965_s3 + $0x38] sm:$0xff]  ;;  %v481_v22 = vld [vmem:[%s1964_s2 + $0x20] sm:$0xff]  ;;  %v1390_v23 = vor.u32 %v1423_v18, %v1389_v17  ;;  %s1354_s29 = sshll.u32 %s1770_s11, 6  ;;  %s1430_s20 = sshll.u32 %s1698_s28, 6 }
  0x37   : > { %v414_v12 = vsel %vm412_vm0, %v389_v7, 0  ;;  %v417_v13 = vsel %vm412_vm0, %v390_v8, 0  ;;  %507 = vperm.xlu2 %1498, %v481_v22   ;;  %v1394_v24 = vor.u32 %v1422_v19, %v1391_v20  ;;  %v1381_v25 = vld [vmem:[%s1774_s6 + $0x10] sm:$0xf]  ;;  %v1421_v26 = vld [vmem:[%s1774_s6 + $0x14] sm:$0xf0]  ;;  %s1262_s30 = scalar_lea.hbm %s1969_s7, %s1430_s20 }
  0x38   : > { %422 = vmatpush.bf16.msra.mxu0 %v414_v12  ;;  %451 = vmatpush.bf16.msra.mxu1 %v417_v13  ;;  %v1420_v27 = vld [vmem:[%s1774_s6 + $0x14] sm:$0xf]  ;;  %v1383_v28 = vld [vmem:[%s1774_s6 + $0x18] sm:$0xf0]  ;;  %v1382_v29 = vor.u32 %v1421_v26, %v1381_v25  ;;  %v1373_v32 = vld [vmem:[%s1774_s6] sm:$0xf] }
  0x39   : > { %v1386_v30 = vor.u32 %v1420_v27, %v1383_v28  ;;  %v545_v31 = vld [vmem:[%s1965_s3 + $0x20] sm:$0xff]  ;;  %v482_v33 = vld [vmem:[%s1964_s2 + $0x28] sm:$0xff]  ;;  %v480_v41 = vld [vmem:[%s1964_s2 + $0x18] sm:$0xff]  ;;  %s1918_s26 = scalar_lea.vmem [#allocation7], %s1354_s29  ;;  %s1251_s16 = scalar_lea.sflag [#allocation4], %s1770_s11 }
  0x3a   : > { %v1419_v34 = vld [vmem:[%s1774_s6 + $0x4] sm:$0xf0]  ;;  %v1418_v35 = vld [vmem:[%s1774_s6 + $0x4] sm:$0xf]  ;;  %v1375_v36 = vld [vmem:[%s1774_s6 + $0x8] sm:$0xf0] }
  0x3b   : > { %v546_v37 = vld [vmem:[%s1965_s3 + $0x28] sm:$0xff]  ;;  %v1374_v38 = vor.u32 %v1419_v34, %v1373_v32  ;;  %v1378_v39 = vor.u32 %v1418_v35, %v1375_v36  ;;  %v1426_v40 = vld [vmem:[%s1963_s1] sm:$0xff]  ;;  %v479_v42 = vld [vmem:[%s1964_s2 + $0x10] sm:$0xff]  ;;  %s1264_s14 = sshll.u32 %s1918_s26, 4  ;;  %s1266_s6 = sshll.u32 %s1262_s30, 4  ;;  %s1265_s14 = int_to_ptr.vmem [resolvable:$true] %s1264_s14  ;;  %s1267_s6 = int_to_ptr.hbm [resolvable:$true] %s1266_s6 }
  0x3c   : > { %522 = vperm.xlu0 %1496, %v484_v16   ;;  %423 = vmatpush.bf16.msra.mxu0 %v1398_v14  ;;  %v543_v43 = vld [vmem:[%s1965_s3 + $0x10] sm:$0xff]  ;;  %v477_v44 = vld [vmem:[%s1964_s2] sm:$0xff]  ;;  %v544_v45 = vld [vmem:[%s1965_s3 + $0x18] sm:$0xff]  ;;  %s1573_s17 = sshra.s32 %s1267_s6, 4  ;;  %s1579_s23 = scalar_lea.hbm %s1969_s7, 128  ;;  %s1574_s17 = int_to_ptr.hbm [resolvable:$true] %s1573_s17 }
  0x3d   : > { %452 = vmatpush.bf16.msra.mxu1 %v1402_v15  ;;  %586 = vperm.xlu1 %1497, %v548_v21   ;;  %v478_v46 = vld [vmem:[%s1964_s2 + $0x8] sm:$0xff]  ;;  %v541_v49 = vld [vmem:[%s1965_s3] sm:$0xff]  ;;  %v1428_v51 = vld [vmem:[%s1963_s1 + $0x10] sm:$0xff]  ;;  %s1575_s18 = scalar_lea.hbm %s1574_s17, 64  ;;  %p1580_p11 = scmp.lt.s32.totalorder %s1574_s17, %s1969_s7 }
  0x3e   : > { %v1427_v47 = vld [vmem:[%s1963_s1 + $0x8] sm:$0xff]  ;;  %v630_v50 = vld [vmem:[%s1967_s5] sm:$0xff]  ;;  %v1429_v52 = vld [vmem:[%s1963_s1 + $0x18] sm:$0xff]  ;;  %p1576_p1 = scmp.ne.s32.totalorder %s1574_s17, %s1575_s18  ;;  %p1581_p9 = scmp.lt.s32.totalorder %s1579_s23, %s1575_s18 }
  0x3f   : > { %512 = vperm.xlu2 %1498, %v482_v33   ;;  %v542_v48 = vld [vmem:[%s1965_s3 + $0x8] sm:$0xff]  ;;  %v788_v13 = vld [vmem:[#allocation5 + $0x3d0] sm:$0xff] }
  0x40   : > { %424 = vmatpush.bf16.msra.mxu0 %v1390_v23  ;;  %v916_v15 = vld [vmem:[#allocation5 + $0x7d0] sm:$0xff]  ;;  %p1577_p4 = pnand %p1576_p1, %p1744_p7  ;;  %p1582_p2 = por %p1581_p9, %p1580_p11 }
  0x41   : > { %453 = vmatpush.bf16.msra.mxu1 %v1394_v24  ;;  %v780_v16 = vld [vmem:[#allocation5 + $0x390] sm:$0xff] }
  0x42   : > { %v908_v17 = vld [vmem:[#allocation5 + $0x790] sm:$0xff]  ;;  %p1578_p8 = pneg %p1577_p4 }
  0x43   : > { %v772_v18 = vld [vmem:[#allocation5 + $0x350] sm:$0xff] }
  0x44   : > { %571 = vperm.xlu0 %1496, %v545_v31   ;;  %425 = vmatpush.bf16.msra.mxu0 %v1382_v29  ;;  %v900_v19 = vld [vmem:[#allocation5 + $0x750] sm:$0xff]  ;;  %p1583_p10 = pnand %p1582_p2, %p1578_p8 }
  0x45   : > { %454 = vmatpush.bf16.msra.mxu1 %v1386_v30  ;;  %576 = vperm.xlu1 %1497, %v546_v37   ;;  %v764_v22 = vld [vmem:[#allocation5 + $0x310] sm:$0xff] }
  0x46   : > { %v892_v23 = vld [vmem:[#allocation5 + $0x710] sm:$0xff] }
  0x47   : > { %497 = vperm.xlu2 %1498, %v479_v42   ;;  %v756_v28 = vld [vmem:[#allocation5 + $0x2d0] sm:$0xff] }
  0x48   : > { %426 = vmatpush.bf16.msra.mxu0 %v1374_v38  ;;  %v884_v29 = vld [vmem:[#allocation5 + $0x6d0] sm:$0xff] }
  0x49   : > { %455 = vmatpush.bf16.msra.mxu1 %v1378_v39  ;;  %v748_v38 = vld [vmem:[#allocation5 + $0x290] sm:$0xff] }
  0x4a   : > { %v876_v39 = vld [vmem:[#allocation5 + $0x690] sm:$0xff] }
  0x4b   : > { %1403 = vmatmul.msk.bf16.vlgmr.msra.gmra.mxu0 %vm399_vm1, %v1426_v40 }
  0x4c   : > { %1407 = vmatmul.msk.bf16.vlgmr.msra.gmra.mxu1 %vm399_vm1, %v1426_v40  ;;  %502 = vperm.xlu0 %1496, %v480_v41  }
  0x4d   : > { %561 = vperm.xlu1 %1497, %v543_v43   ;;  %1002 = vmatpush.msrb.mxu0 %v788_v13 }
  0x4e   : > { %1022 = vmatpush.msrb.mxu1 %v916_v15  ;;  %v716_v15 = vld [vmem:[#allocation5 + $0x190] sm:$0xff] }
  0x4f   : > { %566 = vperm.xlu2 %1498, %v544_v45   ;;  %1003 = vmatpush.msrb.mxu0 %v780_v16  ;;  %v844_v16 = vld [vmem:[#allocation5 + $0x590] sm:$0xff] }
  0x50   : > { %1023 = vmatpush.msrb.mxu1 %v908_v17 }
  0x51   : > { %1004 = vmatpush.msrb.mxu0 %v772_v18 }
  0x52   : > { %1024 = vmatpush.msrb.mxu1 %v900_v19 }
  0x53   : > { %1005 = vmatpush.msrb.mxu0 %v764_v22  ;;  %v708_v22 = vld [vmem:[#allocation5 + $0x150] sm:$0xff] }
  0x54   : > { %487 = vperm.xlu0 %1496, %v477_v44   ;;  %1025 = vmatpush.msrb.mxu1 %v892_v23  ;;  %v836_v23 = vld [vmem:[#allocation5 + $0x550] sm:$0xff] }
  0x55   : > { %492 = vperm.xlu1 %1497, %v478_v46   ;;  %1006 = vmatpush.msrb.mxu0 %v756_v28  ;;  %v828_v28 = vld [vmem:[#allocation5 + $0x510] sm:$0xff] }
  0x56   : > { %1026 = vmatpush.msrb.mxu1 %v884_v29 }
  0x57   : > { %551 = vperm.xlu2 %1498, %v541_v49   ;;  %1007 = vmatpush.msrb.mxu0 %v748_v38  ;;  %v812_v38 = vld [vmem:[#allocation5 + $0x490] sm:$0xff] }
  0x58   : > { %1027 = vmatpush.msrb.mxu1 %v876_v39 }
  0x5b   : > { %1404 = vmatmul.msk.bf16.gmra.mxu0 %vm399_vm1, %v1427_v47 }
  0x5c   : > { %1408 = vmatmul.msk.bf16.gmra.mxu1 %vm399_vm1, %v1427_v47  ;;  %556 = vperm.xlu0 %1496, %v542_v48   ;;  %v740_v47 = vld [vmem:[#allocation5 + $0x250] sm:$0xff] }
  0x5d   : > { %633 = vperm.xlu1 %1497, %v630_v50   ;;  %v868_v48 = vld [vmem:[#allocation5 + $0x650] sm:$0xff]  ;;  %1008 = vmatpush.msrb.mxu0 %v740_v47  ;;  %v906_v47 = vld [vmem:[#allocation5 + $0x780] sm:$0xff] }
  0x5e   : > { %1028 = vmatpush.msrb.mxu1 %v868_v48  ;;  %v668_v48 = vld [vmem:[#allocation5 + $0x10] sm:$0xff] }
  0x6b   : > { %1405 = vmatmul.msk.bf16.gmra.mxu0 %vm399_vm1, %v1428_v51 }
  0x6c   : > { %1409 = vmatmul.msk.bf16.gmra.mxu1 %vm399_vm1, %v1428_v51 }
  0x7b   : > { %1406 = vmatmul.msk.bf16.gmra.mxu0 %vm399_vm1, %v1429_v52 }
  0x7c   : > { %1410 = vmatmul.msk.bf16.gmra.mxu1 %vm399_vm1, %v1429_v52 }
  0x91   : > { %v508_v63 = vpop.permute.xlu2 %507 }
  0x99   : > { %v513_v4 = vpop.permute.xlu2 %512 }
  0xa1   : > { %v498_v9 = vpop.permute.xlu2 %497 }
  0xa6   : > { %v518_v57 = vpop.permute.xlu0 %517 }
  0xa7   : > { %v582_v60 = vpop.permute.xlu1 %581 }
  0xa9   : > { %v567_v24 = vpop.permute.xlu2 %566 }
  0xae   : > { %v523_v0 = vpop.permute.xlu0 %522 }
  0xaf   : > { %v587_v1 = vpop.permute.xlu1 %586 }
  0xb1   : > { %v552_v17 = vpop.permute.xlu2 %551 }
  0xb6   : > { %v572_v5 = vpop.permute.xlu0 %571 }
  0xb7   : > { %v577_v6 = vpop.permute.xlu1 %576 }
  0xbe   : > { %v503_v10 = vpop.permute.xlu0 %502 }
  0xbf   : > { %v1884_v14 = vpop.permute.xlu1 %561 }
  0xc6   : > { %v488_v25 = vpop.permute.xlu0 %487 }
  0xc7   : > { %v493_v42 = vpop.permute.xlu1 %492 }
  0xc8   : > { %v1872_v53 = vpop.f32.mrf.mxu0 }
  0xc9   : > { %v1874_v54 = vpop.f32.mrf.mxu1 }
  0xd0   : > { %v1876_v55 = vpop.f32.mrf.mxu0 }
  0xd1   : > { %v1878_v56 = vpop.f32.mrf.mxu1 }
  0xd8   : > { %v1880_v58 = vpop.f32.mrf.mxu0 }
  0xd9   : > { %v1882_v59 = vpop.f32.mrf.mxu1  ;;  %v529_v49 = vmul.f32 %v498_v9, %v1880_v58  ;;  %v557_v58 = vpop.permute.xlu0 %556 }
  0xda   : > { %v530_v50 = vmul.f32 %v498_v9, %v1882_v59  ;;  %v852_v9 = vld [vmem:[#allocation5 + $0x5d0] sm:$0xff] }
  0xe0   : > { %v435_v61 = vpop.f32.mrf.mxu0 }
  0xe1   : > { %v464_v62 = vpop.f32.mrf.mxu1  ;;  %v531_v40 = vmul.f32 %v503_v10, %v435_v61 }
  0xe2   : > { %v532_v41 = vmul.f32 %v503_v10, %v464_v62  ;;  %v525_v10 = vmul.f32 %v488_v25, %v1872_v53 }
  0xe8   : > { %v438_v2 = vpop.f32.mrf.mxu0 }
  0xe9   : > { %v467_v3 = vpop.f32.mrf.mxu1  ;;  %v533_v30 = vmul.f32 %v508_v63, %v438_v2  ;;  %v527_v2 = vmul.f32 %v493_v42, %v1876_v55  ;;  %v593_v55 = vadd.f32 %v1884_v14, %v529_v49  ;;  %v796_v49 = vld [vmem:[#allocation5 + $0x410] sm:$0xff] }
  0xea   : > { %v534_v31 = vmul.f32 %v508_v63, %v467_v3  ;;  %v732_v63 = vld [vmem:[#allocation5 + $0x210] sm:$0xff]  ;;  %v595_v3 = vadd.f32 %v567_v24, %v531_v40 }
  0xeb   : > { %v597_v51 = vadd.f32 %v572_v5, %v533_v30  ;;  %1009 = vmatpush.msrb.mxu0 %v732_v63  ;;  %v591_v18 = vadd.f32 %v557_v58, %v527_v2  ;;  %v910_v63 = vld [vmem:[#allocation5 + $0x7a0] sm:$0xff] }
  0xec   : > { %v598_v52 = vadd.f32 %v572_v5, %v534_v31  ;;  %v882_v2 = vld [vmem:[#allocation5 + $0x6c0] sm:$0xff] }
  0xed   : > { %v607_v29 = vmax.f32 %v591_v18, 0.0  ;;  %v842_v18 = vld [vmem:[#allocation5 + $0x580] sm:$0xff] }
  0xee   : > { %v614_v13 = vmax.f32 %v598_v52, 0.0  ;;  %v790_v52 = vld [vmem:[#allocation5 + $0x3e0] sm:$0xff] }
  0xf0   : > { %v440_v7 = vpop.f32.mrf.mxu0 }
  0xf1   : > { %v469_v8 = vpop.f32.mrf.mxu1  ;;  %v535_v26 = vmul.f32 %v513_v4, %v440_v7 }
  0xf2   : > { %v536_v27 = vmul.f32 %v513_v4, %v469_v8  ;;  %v596_v4 = vadd.f32 %v567_v24, %v532_v41  ;;  %v724_v8 = vld [vmem:[#allocation5 + $0x1d0] sm:$0xff]  ;;  %v786_v41 = vld [vmem:[#allocation5 + $0x3c0] sm:$0xff] }
  0xf3   : > { %v599_v43 = vadd.f32 %v577_v6, %v535_v26  ;;  %1010 = vmatpush.msrb.mxu0 %v724_v8  ;;  %v758_v8 = vld [vmem:[#allocation5 + $0x2e0] sm:$0xff] }
  0xf4   : > { %v600_v44 = vadd.f32 %v577_v6, %v536_v27  ;;  %v612_v53 = vmax.f32 %v596_v4, 0.0  ;;  %v700_v27 = vld [vmem:[#allocation5 + $0x110] sm:$0xff]  ;;  %v746_v4 = vld [vmem:[#allocation5 + $0x280] sm:$0xff] }
  0xf5   : > { %v615_v6 = vmax.f32 %v599_v43, 0.0  ;;  %1011 = vmatpush.msrb.mxu0 %v716_v15  ;;  %v676_v43 = vld [vmem:[#allocation5 + $0x50] sm:$0xff]  ;;  %v742_v15 = vld [vmem:[#allocation5 + $0x260] sm:$0xff] }
  0xf6   : > { %v616_v59 = vmax.f32 %v600_v44, 0.0  ;;  %v804_v44 = vld [vmem:[#allocation5 + $0x450] sm:$0xff] }
  0xf7   : > { %1012 = vmatpush.msrb.mxu0 %v708_v22  ;;  %v854_v22 = vld [vmem:[#allocation5 + $0x5e0] sm:$0xff] }
  0xf8   : > { %v443_v11 = vpop.f32.mrf.mxu0 }
  0xf9   : > { %v472_v12 = vpop.f32.mrf.mxu1  ;;  %v537_v20 = vmul.f32 %v518_v57, %v443_v11  ;;  %v526_v11 = vmul.f32 %v488_v25, %v1874_v54  ;;  %v627_v54 = vpack.c.bf16 %v616_v59, %v614_v13  ;;  %v609_v25 = vmax.f32 %v593_v55, 0.0  ;;  %1013 = vmatpush.msrb.mxu0 %v700_v27  ;;  %v894_v59 = vld [vmem:[#allocation5 + $0x720] sm:$0xff] }
  0xfa   : > { %v538_v21 = vmul.f32 %v518_v57, %v472_v12  ;;  %v613_v12 = vmax.f32 %v597_v51, 0.0  ;;  %v898_v51 = vld [vmem:[#allocation5 + $0x740] sm:$0xff] }
  0xfb   : > { %v601_v36 = vadd.f32 %v582_v60, %v537_v20  ;;  %v611_v20 = vmax.f32 %v595_v3, 0.0  ;;  %v590_v24 = vadd.f32 %v552_v17, %v526_v11  ;;  %v902_v3 = vld [vmem:[#allocation5 + $0x760] sm:$0xff] }
  0xfc   : > { %v602_v37 = vadd.f32 %v582_v60, %v538_v21  ;;  %v626_v21 = vpack.c.bf16 %v615_v6, %v613_v12  ;;  %v766_v6 = vld [vmem:[#allocation5 + $0x320] sm:$0xff] }
  0xfd   : > { %v617_v57 = vmax.f32 %v601_v36, 0.0  ;;  %v624_v31 = vpack.c.bf16 %v611_v20, %v609_v25  ;;  %v606_v36 = vmax.f32 %v590_v24, 0.0  ;;  %v858_v11 = vld [vmem:[#allocation5 + $0x600] sm:$0xff] }
  0xfe   : > { %v618_v61 = vmax.f32 %v602_v37, 0.0  ;;  %v684_v37 = vld [vmem:[#allocation5 + $0x90] sm:$0xff]  ;;  %v750_v55 = vld [vmem:[#allocation5 + $0x2a0] sm:$0xff] }
  0xff   : > { %v722_v12 = vld [vmem:[#allocation5 + $0x1c0] sm:$0xff] }
 0x100   : > { %v445_v32 = vpop.f32.mrf.mxu0  ;;  %v850_v13 = vld [vmem:[#allocation5 + $0x5c0] sm:$0xff] }
 0x101   : > { %v474_v33 = vpop.f32.mrf.mxu1  ;;  %v539_v34 = vmul.f32 %v523_v0, %v445_v32  ;;  %v862_v20 = vld [vmem:[#allocation5 + $0x620] sm:$0xff] }
 0x102   : > { %v540_v35 = vmul.f32 %v523_v0, %v474_v33  ;;  %v860_v0 = vld [vmem:[#allocation5 + $0x610] sm:$0xff]  ;;  %v718_v24 = vld [vmem:[#allocation5 + $0x1a0] sm:$0xff] }
 0x103   : > { %v603_v45 = vadd.f32 %v587_v1, %v539_v34  ;;  %1029 = vmatpush.msrb.mxu1 %v860_v0  ;;  %v692_v33 = vld [vmem:[#allocation5 + $0xd0] sm:$0xff]  ;;  %v754_v0 = vld [vmem:[#allocation5 + $0x2c0] sm:$0xff] }
 0x104   : > { %v604_v46 = vadd.f32 %v587_v1, %v540_v35  ;;  %v528_v1 = vmul.f32 %v493_v42, %v1878_v56  ;;  %v594_v56 = vadd.f32 %v1884_v14, %v530_v50  ;;  %v589_v14 = vadd.f32 %v552_v17, %v525_v10  ;;  %v820_v34 = vld [vmem:[#allocation5 + $0x4d0] sm:$0xff]  ;;  %1014 = vmatpush.msrb.mxu0 %v692_v33  ;;  %v914_v42 = vld [vmem:[#allocation5 + $0x7c0] sm:$0xff] }
 0x105   : > { %v619_v60 = vmax.f32 %v603_v45, 0.0  ;;  %1030 = vmatpush.msrb.mxu1 %v852_v9  ;;  %v621_v45 = vld [vmem:[%s1966_s4] sm:$0xf]  ;;  %v770_v50 = vld [vmem:[#allocation5 + $0x340] sm:$0xff] }
 0x106   : > { %v620_v62 = vmax.f32 %v604_v46, 0.0  ;;  %v592_v19 = vadd.f32 %v557_v58, %v528_v1  ;;  %v610_v26 = vmax.f32 %v594_v56, 0.0  ;;  %v605_v35 = vmax.f32 %v589_v14, 0.0  ;;  %1015 = vmatpush.msrb.mxu0 %v684_v37  ;;  %v778_v46 = vld [vmem:[#allocation5 + $0x380] sm:$0xff] }
 0x107   : > { %v628_v7 = vpack.c.bf16 %v619_v60, %v617_v57  ;;  %1031 = vmatpush.msrb.mxu1 %v844_v16  ;;  %v918_v57 = vld [vmem:[#allocation5 + $0x7e0] sm:$0xff] }
 0x108   : > { %v629_v5 = vpack.c.bf16 %v620_v62, %v618_v61  ;;  %v608_v30 = vmax.f32 %v592_v19, 0.0  ;;  %v625_v32 = vpack.c.bf16 %v612_v53, %v610_v26  ;;  %v622_v39 = vpack.c.bf16 %v607_v29, %v605_v35  ;;  %1016 = vmatpush.msrb.mxu0 %v676_v43  ;;  %v762_v60 = vld [vmem:[#allocation5 + $0x300] sm:$0xff] }
 0x109   : > { %644 = vmatpush.bf16.msra.mxu2 %v628_v7  ;;  %1032 = vmatpush.msrb.mxu1 %v836_v23  ;;  %v890_v61 = vld [vmem:[#allocation5 + $0x700] sm:$0xff] }
 0x10a   : > { %657 = vmatpush.bf16.msra.mxu3 %v629_v5  ;;  %v623_v40 = vpack.c.bf16 %v608_v30, %v606_v36  ;;  %1017 = vmatpush.msrb.mxu0 %v668_v48  ;;  %v782_v62 = vld [vmem:[#allocation5 + $0x3a0] sm:$0xff]  ;;  %v763_v48 = vld [vmem:[#allocation5 + $0x308] sm:$0xff] }
 0x10b   : > { %1033 = vmatpush.msrb.mxu1 %v828_v28  ;;  %v774_v1 = vld [vmem:[#allocation5 + $0x360] sm:$0xff] }
 0x10c   : > { %1082 = vmatpush.msra.mxu0 %v790_v52  ;;  %v874_v58 = vld [vmem:[#allocation5 + $0x680] sm:$0xff]  ;;  %v747_v52 = vld [vmem:[#allocation5 + $0x288] sm:$0xff] }
 0x10d   : > { %645 = vmatpush.bf16.msra.mxu2 %v626_v21  ;;  %1034 = vmatpush.msrb.mxu1 %v820_v34  ;;  %v738_v7 = vld [vmem:[#allocation5 + $0x240] sm:$0xff] }
 0x10e   : > { %658 = vmatpush.bf16.msra.mxu3 %v627_v54  ;;  %1083 = vmatpush.msra.mxu0 %v782_v62  ;;  %v866_v5 = vld [vmem:[#allocation5 + $0x640] sm:$0xff]  ;;  %v731_v62 = vld [vmem:[#allocation5 + $0x208] sm:$0xff] }
 0x10f   : > { %1035 = vmatpush.msrb.mxu1 %v812_v38  ;;  %v886_v9 = vld [vmem:[#allocation5 + $0x6e0] sm:$0xff] }
 0x110   : > { %1084 = vmatpush.msra.mxu0 %v774_v1  ;;  %v730_v10 = vld [vmem:[#allocation5 + $0x200] sm:$0xff]  ;;  %v715_v1 = vld [vmem:[#allocation5 + $0x188] sm:$0xff] }
 0x111   : > { %646 = vmatpush.bf16.msra.mxu2 %v624_v31  ;;  %1036 = vmatpush.msrb.mxu1 %v804_v44  ;;  %v878_v56 = vld [vmem:[#allocation5 + $0x6a0] sm:$0xff]  ;;  %v779_v44 = vld [vmem:[#allocation5 + $0x388] sm:$0xff] }
 0x112   : > { %659 = vmatpush.bf16.msra.mxu3 %v625_v32  ;;  %1085 = vmatpush.msra.mxu0 %v766_v6  ;;  %v870_v16 = vld [vmem:[#allocation5 + $0x660] sm:$0xff]  ;;  %v699_v6 = vld [vmem:[#allocation5 + $0x108] sm:$0xff] }
 0x113   : > { %1037 = vmatpush.msrb.mxu1 %v796_v49  ;;  %v714_v17 = vld [vmem:[#allocation5 + $0x180] sm:$0xff]  ;;  %v891_v49 = vld [vmem:[#allocation5 + $0x708] sm:$0xff] }
 0x114   : > { %1086 = vmatpush.msra.mxu0 %v758_v8  ;;  %v734_v19 = vld [vmem:[#allocation5 + $0x220] sm:$0xff]  ;;  %v683_v8 = vld [vmem:[#allocation5 + $0x88] sm:$0xff] }
 0x115   : > { %647 = vmatpush.bf16.msra.mxu2 %v622_v39  ;;  %1102 = vmatpush.msra.mxu1 %v918_v57  ;;  %v706_v53 = vld [vmem:[#allocation5 + $0x140] sm:$0xff]  ;;  %v875_v57 = vld [vmem:[#allocation5 + $0x688] sm:$0xff] }
 0x116   : > { %660 = vmatpush.bf16.msra.mxu3 %v623_v40  ;;  %1087 = vmatpush.msra.mxu0 %v750_v55  ;;  %v834_v21 = vld [vmem:[#allocation5 + $0x540] sm:$0xff]  ;;  %v787_v40 = vld [vmem:[#allocation5 + $0x3c8] sm:$0xff] }
 0x117   : > { %1103 = vmatpush.msra.mxu1 %v910_v63  ;;  %v726_v54 = vld [vmem:[#allocation5 + $0x1e0] sm:$0xff]  ;;  %v859_v63 = vld [vmem:[#allocation5 + $0x608] sm:$0xff] }
 0x118   : > { %1411 = vmatmul.msk.bf16.vlgmr.msra.gmra.mxu2 %vm636_vm2, %v621_v45  ;;  %1088 = vmatpush.msra.mxu0 %v742_v15  ;;  %v698_v23 = vld [vmem:[#allocation5 + $0x100] sm:$0xff] }
 0x119   : > { %922 = vmatpush.msrb.mxu2 %v786_v41  ;;  %1412 = vmatmul.msk.bf16.vlgmr.msra.gmra.mxu3 %vm636_vm2, %v621_v45  ;;  %v826_v14 = vld [vmem:[#allocation5 + $0x500] sm:$0xff]  ;;  %v915_v41 = vld [vmem:[#allocation5 + $0x7c8] sm:$0xff] }
 0x11a   : > { %942 = vmatpush.msrb.mxu3 %v914_v42  ;;  %1104 = vmatpush.msra.mxu1 %v902_v3  ;;  %v846_v25 = vld [vmem:[#allocation5 + $0x5a0] sm:$0xff]  ;;  %v907_v45 = vld [vmem:[#allocation5 + $0x788] sm:$0xff] }
 0x11b   : > { %923 = vmatpush.msrb.mxu2 %v778_v46  ;;  %1089 = vmatpush.msra.mxu0 %v734_v19  ;;  %v690_v26 = vld [vmem:[#allocation5 + $0xc0] sm:$0xff]  ;;  %v771_v46 = vld [vmem:[#allocation5 + $0x348] sm:$0xff] }
 0x11c   : > { %943 = vmatpush.msrb.mxu3 %v906_v47  ;;  %1105 = vmatpush.msra.mxu1 %v894_v59  ;;  %v818_v27 = vld [vmem:[#allocation5 + $0x4c0] sm:$0xff]  ;;  %v899_v47 = vld [vmem:[#allocation5 + $0x748] sm:$0xff] }
 0x11d   : > { %924 = vmatpush.msrb.mxu2 %v770_v50  ;;  %1090 = vmatpush.msra.mxu0 %v726_v54  ;;  %v710_v28 = vld [vmem:[#allocation5 + $0x160] sm:$0xff]  ;;  %v755_v50 = vld [vmem:[#allocation5 + $0x2c8] sm:$0xff]  ;;  %v917_v54 = vld [vmem:[#allocation5 + $0x7d8] sm:$0xff] }
 0x11e   : > { %944 = vmatpush.msrb.mxu3 %v898_v51  ;;  %1106 = vmatpush.msra.mxu1 %v886_v9  ;;  %v838_v29 = vld [vmem:[#allocation5 + $0x560] sm:$0xff]  ;;  %v883_v51 = vld [vmem:[#allocation5 + $0x6c8] sm:$0xff] }
 0x11f   : > { %925 = vmatpush.msrb.mxu2 %v762_v60  ;;  %v682_v30 = vld [vmem:[#allocation5 + $0x80] sm:$0xff]  ;;  %1091 = vmatpush.msra.mxu0 %v718_v24  ;;  %v739_v60 = vld [vmem:[#allocation5 + $0x248] sm:$0xff]  ;;  %v909_v24 = vld [vmem:[#allocation5 + $0x798] sm:$0xff] }
 0x120   : > { %945 = vmatpush.msrb.mxu3 %v890_v61  ;;  %1107 = vmatpush.msra.mxu1 %v878_v56  ;;  %v810_v31 = vld [vmem:[#allocation5 + $0x480] sm:$0xff]  ;;  %v867_v61 = vld [vmem:[#allocation5 + $0x648] sm:$0xff] }
 0x121   : > { %926 = vmatpush.msrb.mxu2 %v754_v0  ;;  %v702_v32 = vld [vmem:[#allocation5 + $0x120] sm:$0xff]  ;;  %1092 = vmatpush.msra.mxu0 %v710_v28  ;;  %v723_v0 = vld [vmem:[#allocation5 + $0x1c8] sm:$0xff]  ;;  %v901_v28 = vld [vmem:[#allocation5 + $0x758] sm:$0xff] }
 0x122   : > { %946 = vmatpush.msrb.mxu3 %v882_v2  ;;  %1108 = vmatpush.msra.mxu1 %v870_v16  ;;  %v830_v33 = vld [vmem:[#allocation5 + $0x520] sm:$0xff]  ;;  %v851_v2 = vld [vmem:[#allocation5 + $0x5c8] sm:$0xff] }
 0x123   : > { %927 = vmatpush.msrb.mxu2 %v746_v4  ;;  %v674_v34 = vld [vmem:[#allocation5 + $0x40] sm:$0xff]  ;;  %1093 = vmatpush.msra.mxu0 %v702_v32  ;;  %v843_v3 = vld [vmem:[#allocation5 + $0x588] sm:$0xff] }
 0x124   : > { %947 = vmatpush.msrb.mxu3 %v874_v58  ;;  %1109 = vmatpush.msra.mxu1 %v862_v20  ;;  %v802_v35 = vld [vmem:[#allocation5 + $0x440] sm:$0xff]  ;;  %v707_v4 = vld [vmem:[#allocation5 + $0x148] sm:$0xff] }
 0x125   : > { %928 = vmatpush.msrb.mxu2 %v738_v7  ;;  %v694_v36 = vld [vmem:[#allocation5 + $0xe0] sm:$0xff]  ;;  %v835_v58 = vld [vmem:[#allocation5 + $0x548] sm:$0xff] }
 0x126   : > { %948 = vmatpush.msrb.mxu3 %v866_v5  ;;  %1110 = vmatpush.msra.mxu1 %v854_v22  ;;  %v822_v37 = vld [vmem:[#allocation5 + $0x4e0] sm:$0xff]  ;;  %v827_v59 = vld [vmem:[#allocation5 + $0x508] sm:$0xff]  ;;  %v792_v22 = vld [vmem:[#allocation5 + $0x3f0] sm:$0xff] }
 0x127   : > { %929 = vmatpush.msrb.mxu2 %v730_v10  ;;  %v666_v38 = vld [vmem:[#allocation5] sm:$0xff]  ;;  %1094 = vmatpush.msra.mxu0 %v694_v36  ;;  %v691_v7 = vld [vmem:[#allocation5 + $0xc8] sm:$0xff]  ;;  %v896_v36 = vld [vmem:[#allocation5 + $0x730] sm:$0xff] }
 0x128   : > { %949 = vmatpush.msrb.mxu3 %v858_v11  ;;  %1111 = vmatpush.msra.mxu1 %v846_v25  ;;  %v794_v39 = vld [vmem:[#allocation5 + $0x400] sm:$0xff]  ;;  %v819_v5 = vld [vmem:[#allocation5 + $0x4c8] sm:$0xff]  ;;  %v784_v25 = vld [vmem:[#allocation5 + $0x3b0] sm:$0xff] }
 0x129   : > { %930 = vmatpush.msrb.mxu2 %v722_v12  ;;  %v686_v42 = vld [vmem:[#allocation5 + $0xa0] sm:$0xff]  ;;  %v811_v9 = vld [vmem:[#allocation5 + $0x488] sm:$0xff] }
 0x12a   : > { %950 = vmatpush.msrb.mxu3 %v850_v13  ;;  %1112 = vmatpush.msra.mxu1 %v838_v29  ;;  %v814_v43 = vld [vmem:[#allocation5 + $0x4a0] sm:$0xff]  ;;  %v675_v10 = vld [vmem:[#allocation5 + $0x48] sm:$0xff]  ;;  %v776_v29 = vld [vmem:[#allocation5 + $0x370] sm:$0xff] }
 0x12b   : > { %931 = vmatpush.msrb.mxu2 %v714_v17  ;;  %1095 = vmatpush.msra.mxu0 %v686_v42  ;;  %v803_v11 = vld [vmem:[#allocation5 + $0x448] sm:$0xff]  ;;  %v678_v55 = vld [vmem:[#allocation5 + $0x60] sm:$0xff]  ;;  %v634_v17 = vpop.permute.xlu1 %633  ;;  %v877_v42 = vld [vmem:[#allocation5 + $0x698] sm:$0xff] }
 0x12c   : > { %951 = vmatpush.msrb.mxu3 %v842_v18  ;;  %1113 = vmatpush.msra.mxu1 %v830_v33  ;;  %v806_v56 = vld [vmem:[#allocation5 + $0x460] sm:$0xff]  ;;  %v667_v12 = vld [vmem:[#allocation5 + $0x8] sm:$0xff]  ;;  %v765_v33 = vld [vmem:[#allocation5 + $0x318] sm:$0xff] }
 0x12d   : > { %932 = vmatpush.msrb.mxu2 %v706_v53  ;;  %1096 = vmatpush.msra.mxu0 %v678_v55  ;;  %v795_v13 = vld [vmem:[#allocation5 + $0x408] sm:$0xff]  ;;  %v670_v15 = vld [vmem:[#allocation5 + $0x20] sm:$0xff]  ;;  %v824_v55 = vld [vmem:[#allocation5 + $0x4f0] sm:$0xff] }
 0x12e   : > { %952 = vmatpush.msrb.mxu3 %v834_v21  ;;  %1114 = vmatpush.msra.mxu1 %v822_v37  ;;  %v798_v16 = vld [vmem:[#allocation5 + $0x420] sm:$0xff]  ;;  %v789_v21 = vld [vmem:[#allocation5 + $0x3d8] sm:$0xff] }
 0x12f   : > { %933 = vmatpush.msrb.mxu2 %v698_v23  ;;  %1097 = vmatpush.msra.mxu0 %v670_v15  ;;  %v920_v23 = vld [vmem:[#allocation5 + $0x7f0] sm:$0xff]  ;;  %v757_v37 = vld [vmem:[#allocation5 + $0x2d8] sm:$0xff] }
 0x130   : > { %953 = vmatpush.msrb.mxu3 %v826_v14  ;;  %1115 = vmatpush.msra.mxu1 %v814_v43  ;;  %v781_v14 = vld [vmem:[#allocation5 + $0x398] sm:$0xff]  ;;  %v752_v43 = vld [vmem:[#allocation5 + $0x2b0] sm:$0xff] }
 0x131   : > { %934 = vmatpush.msrb.mxu2 %v690_v26  ;;  %v912_v26 = vld [vmem:[#allocation5 + $0x7b0] sm:$0xff] }
 0x132   : > { %954 = vmatpush.msrb.mxu3 %v818_v27  ;;  %1116 = vmatpush.msra.mxu1 %v806_v56  ;;  %v773_v27 = vld [vmem:[#allocation5 + $0x358] sm:$0xff]  ;;  %v816_v15 = vld [vmem:[#allocation5 + $0x4b0] sm:$0xff] }
 0x133   : > { %935 = vmatpush.msrb.mxu2 %v682_v30  ;;  %v904_v30 = vld [vmem:[#allocation5 + $0x770] sm:$0xff]  ;;  %v685_v56 = vld [vmem:[#allocation5 + $0x98] sm:$0xff] }
 0x134   : > { %955 = vmatpush.msrb.mxu3 %v810_v31  ;;  %1117 = vmatpush.msra.mxu1 %v798_v16  ;;  %v677_v16 = vld [vmem:[#allocation5 + $0x58] sm:$0xff] }
 0x135   : > { %936 = vmatpush.msrb.mxu2 %v674_v34  ;;  %v893_v34 = vld [vmem:[#allocation5 + $0x718] sm:$0xff] }
 0x136   : > { %956 = vmatpush.msrb.mxu3 %v802_v35  ;;  %v768_v35 = vld [vmem:[#allocation5 + $0x330] sm:$0xff] }
 0x137   : > { %937 = vmatpush.msrb.mxu2 %v666_v38  ;;  %v885_v38 = vld [vmem:[#allocation5 + $0x6d8] sm:$0xff] }
 0x138   : > { %957 = vmatpush.msrb.mxu3 %v794_v39  ;;  %v760_v39 = vld [vmem:[#allocation5 + $0x2f0] sm:$0xff] }
 0x139   : > { %962 = vmatpush.msra.mxu2 %v787_v40  ;;  %v888_v40 = vld [vmem:[#allocation5 + $0x6f0] sm:$0xff] }
 0x13a   : > { %982 = vmatpush.msra.mxu3 %v915_v41  ;;  %v749_v41 = vld [vmem:[#allocation5 + $0x298] sm:$0xff] }
 0x13b   : > { %963 = vmatpush.msra.mxu2 %v779_v44  ;;  %v880_v44 = vld [vmem:[#allocation5 + $0x6b0] sm:$0xff] }
 0x13c   : > { %983 = vmatpush.msra.mxu3 %v907_v45  ;;  %v741_v45 = vld [vmem:[#allocation5 + $0x258] sm:$0xff] }
 0x13d   : > { %964 = vmatpush.msra.mxu2 %v771_v46  ;;  %v869_v46 = vld [vmem:[#allocation5 + $0x658] sm:$0xff] }
 0x13e   : > { %984 = vmatpush.msra.mxu3 %v899_v47  ;;  %v744_v47 = vld [vmem:[#allocation5 + $0x270] sm:$0xff] }
 0x13f   : > { %965 = vmatpush.msra.mxu2 %v763_v48  ;;  %v872_v48 = vld [vmem:[#allocation5 + $0x670] sm:$0xff] }
 0x140   : > { %985 = vmatpush.msra.mxu3 %v891_v49  ;;  %v733_v49 = vld [vmem:[#allocation5 + $0x218] sm:$0xff] }
 0x141   : > { %966 = vmatpush.msra.mxu2 %v755_v50  ;;  %v861_v50 = vld [vmem:[#allocation5 + $0x618] sm:$0xff] }
 0x142   : > { %986 = vmatpush.msra.mxu3 %v883_v51  ;;  %v736_v51 = vld [vmem:[#allocation5 + $0x230] sm:$0xff] }
 0x143   : > { %967 = vmatpush.msra.mxu2 %v747_v52  ;;  %v864_v52 = vld [vmem:[#allocation5 + $0x630] sm:$0xff] }
 0x144   : > { %987 = vmatpush.msra.mxu3 %v875_v57  ;;  %v725_v57 = vld [vmem:[#allocation5 + $0x1d8] sm:$0xff] }
 0x145   : > { %968 = vmatpush.msra.mxu2 %v739_v60  ;;  %v853_v60 = vld [vmem:[#allocation5 + $0x5d8] sm:$0xff] }
 0x146   : > { %988 = vmatpush.msra.mxu3 %v867_v61  ;;  %v728_v61 = vld [vmem:[#allocation5 + $0x1f0] sm:$0xff] }
 0x147   : > { %969 = vmatpush.msra.mxu2 %v731_v62  ;;  %v856_v62 = vld [vmem:[#allocation5 + $0x5f0] sm:$0xff] }
 0x148   : > { %989 = vmatpush.msra.mxu3 %v859_v63  ;;  %v717_v63 = vld [vmem:[#allocation5 + $0x198] sm:$0xff] }
 0x149   : > { %970 = vmatpush.msra.mxu2 %v723_v0  ;;  %v845_v0 = vld [vmem:[#allocation5 + $0x598] sm:$0xff] }
 0x14a   : > { %990 = vmatpush.msra.mxu3 %v851_v2  ;;  %v720_v2 = vld [vmem:[#allocation5 + $0x1b0] sm:$0xff] }
 0x14b   : > { %971 = vmatpush.msra.mxu2 %v715_v1  ;;  %v848_v1 = vld [vmem:[#allocation5 + $0x5b0] sm:$0xff] }
 0x14c   : > { %991 = vmatpush.msra.mxu3 %v843_v3  ;;  %v709_v3 = vld [vmem:[#allocation5 + $0x158] sm:$0xff] }
 0x14d   : > { %972 = vmatpush.msra.mxu2 %v707_v4  ;;  %v837_v4 = vld [vmem:[#allocation5 + $0x558] sm:$0xff] }
 0x14e   : > { %992 = vmatpush.msra.mxu3 %v835_v58  ;;  %v712_v58 = vld [vmem:[#allocation5 + $0x170] sm:$0xff] }
 0x14f   : > { %973 = vmatpush.msra.mxu2 %v699_v6  ;;  %v840_v6 = vld [vmem:[#allocation5 + $0x570] sm:$0xff] }
 0x150   : > { %993 = vmatpush.msra.mxu3 %v827_v59  ;;  %v701_v59 = vld [vmem:[#allocation5 + $0x118] sm:$0xff] }
 0x151   : > { %974 = vmatpush.msra.mxu2 %v691_v7  ;;  %v829_v7 = vld [vmem:[#allocation5 + $0x518] sm:$0xff] }
 0x152   : > { %994 = vmatpush.msra.mxu3 %v819_v5  ;;  %v704_v5 = vld [vmem:[#allocation5 + $0x130] sm:$0xff] }
 0x153   : > { %975 = vmatpush.msra.mxu2 %v683_v8  ;;  %v832_v8 = vld [vmem:[#allocation5 + $0x530] sm:$0xff] }
 0x154   : > { %995 = vmatpush.msra.mxu3 %v811_v9  ;;  %v693_v9 = vld [vmem:[#allocation5 + $0xd8] sm:$0xff] }
 0x155   : > { %976 = vmatpush.msra.mxu2 %v675_v10  ;;  %v821_v10 = vld [vmem:[#allocation5 + $0x4d8] sm:$0xff] }
 0x156   : > { %996 = vmatpush.msra.mxu3 %v803_v11  ;;  %v696_v11 = vld [vmem:[#allocation5 + $0xf0] sm:$0xff] }
 0x157   : > { %977 = vmatpush.msra.mxu2 %v667_v12  ;;  %v813_v12 = vld [vmem:[#allocation5 + $0x498] sm:$0xff] }
 0x158   : > { %997 = vmatpush.msra.mxu3 %v795_v13  ;;  %v688_v13 = vld [vmem:[#allocation5 + $0xb0] sm:$0xff] }
 0x19b   : > { %v649_v18 = vpop.f32.mrf.mxu2 }
 0x19c   : > { %v662_v19 = vpop.f32.mrf.mxu3  ;;  %v1897_v20 = vadd.f32 %v649_v18, %v634_v17  ;;  %v680_v18 = vld [vmem:[#allocation5 + $0x70] sm:$0xff] }
 0x19d   : > { %v1899_v53 = vadd.f32 %v662_v19, %v634_v17  ;;  %v805_v17 = vld [vmem:[#allocation5 + $0x458] sm:$0xff]  ;;  %v808_v19 = vld [vmem:[#allocation5 + $0x470] sm:$0xff] }
 0x19e   : > { %938 = vmatmul.f32.vlgmr.msrb.gmra.mxu2 %v1897_v20  ;;  %1018 = vmatmul.f32.vlgmr.msrb.gmra.mxu0 %v1897_v20 }
 0x19f   : > { %958 = vmatmul.f32.vlgmr.msrb.gmra.mxu3 %v1899_v53  ;;  %1038 = vmatmul.f32.vlgmr.msrb.gmra.mxu1 %v1899_v53 }
 0x1a0   : > { %1042 = vmatpush.msrb.mxu2 %v789_v21  ;;  %1062 = vmatpush.msrb.mxu3 %v917_v54  ;;  %v669_v21 = vld [vmem:[#allocation5 + $0x18] sm:$0xff] }
 0x1a1   : > { %1162 = vmatpush.msrb.mxu0 %v792_v22  ;;  %1182 = vmatpush.msrb.mxu1 %v920_v23  ;;  %v797_v54 = vld [vmem:[#allocation5 + $0x418] sm:$0xff]  ;;  %v672_v22 = vld [vmem:[#allocation5 + $0x30] sm:$0xff] }
 0x1a2   : > { %1043 = vmatpush.msrb.mxu2 %v781_v14  ;;  %1063 = vmatpush.msrb.mxu3 %v909_v24  ;;  %v800_v23 = vld [vmem:[#allocation5 + $0x430] sm:$0xff]  ;;  %v791_v14 = vld [vmem:[#allocation5 + $0x3e8] sm:$0xff] }
 0x1a3   : > { %1163 = vmatpush.msrb.mxu0 %v784_v25  ;;  %1183 = vmatpush.msrb.mxu1 %v912_v26  ;;  %v651_v31 = vpop.f32.mrf.mxu2  ;;  %v919_v24 = vld [vmem:[#allocation5 + $0x7e8] sm:$0xff] }
 0x1a4   : > { %v664_v32 = vpop.f32.mrf.mxu3  ;;  %1044 = vmatpush.msrb.mxu2 %v773_v27  ;;  %1064 = vmatpush.msrb.mxu3 %v901_v28  ;;  %v783_v25 = vld [vmem:[#allocation5 + $0x3a8] sm:$0xff] }
 0x1a5   : > { %1164 = vmatpush.msrb.mxu0 %v776_v29  ;;  %1184 = vmatpush.msrb.mxu1 %v904_v30  ;;  %v911_v26 = vld [vmem:[#allocation5 + $0x7a8] sm:$0xff] }
 0x1a6   : > { %1045 = vmatpush.msrb.mxu2 %v765_v33  ;;  %1065 = vmatpush.msrb.mxu3 %v893_v34  ;;  %v775_v27 = vld [vmem:[#allocation5 + $0x368] sm:$0xff] }
 0x1a7   : > { %1165 = vmatpush.msrb.mxu0 %v768_v35  ;;  %1185 = vmatpush.msrb.mxu1 %v896_v36  ;;  %v903_v28 = vld [vmem:[#allocation5 + $0x768] sm:$0xff] }
 0x1a8   : > { %978 = vmatmul.f32.vlgmr.msra.gmra.mxu2 %v1897_v20  ;;  %998 = vmatmul.f32.vlgmr.msra.gmra.mxu3 %v1899_v53  ;;  %v767_v29 = vld [vmem:[#allocation5 + $0x328] sm:$0xff] }
 0x1a9   : > { %1046 = vmatpush.msrb.mxu2 %v757_v37  ;;  %1066 = vmatpush.msrb.mxu3 %v885_v38  ;;  %v895_v30 = vld [vmem:[#allocation5 + $0x728] sm:$0xff] }
 0x1aa   : > { %1098 = vmatmul.f32.vlgmr.msra.gmra.mxu0 %v1897_v20  ;;  %1118 = vmatmul.f32.vlgmr.msra.gmra.mxu1 %v1899_v53  ;;  %v759_v31 = vld [vmem:[#allocation5 + $0x2e8] sm:$0xff] }
 0x1ab   : > { %1166 = vmatpush.msrb.mxu0 %v760_v39  ;;  %1186 = vmatpush.msrb.mxu1 %v888_v40  ;;  %v887_v32 = vld [vmem:[#allocation5 + $0x6e8] sm:$0xff] }
 0x1ac   : > { %1047 = vmatpush.msrb.mxu2 %v749_v41  ;;  %1067 = vmatpush.msrb.mxu3 %v877_v42  ;;  %v751_v33 = vld [vmem:[#allocation5 + $0x2a8] sm:$0xff] }
 0x1ad   : > { %1167 = vmatpush.msrb.mxu0 %v752_v43  ;;  %1187 = vmatpush.msrb.mxu1 %v880_v44  ;;  %v879_v34 = vld [vmem:[#allocation5 + $0x6a8] sm:$0xff] }
 0x1ae   : > { %1048 = vmatpush.msrb.mxu2 %v741_v45  ;;  %1068 = vmatpush.msrb.mxu3 %v869_v46  ;;  %v743_v35 = vld [vmem:[#allocation5 + $0x268] sm:$0xff] }
 0x1af   : > { %1168 = vmatpush.msrb.mxu0 %v744_v47  ;;  %1188 = vmatpush.msrb.mxu1 %v872_v48  ;;  %v871_v36 = vld [vmem:[#allocation5 + $0x668] sm:$0xff] }
 0x1b0   : > { %1049 = vmatpush.msrb.mxu2 %v733_v49  ;;  %1069 = vmatpush.msrb.mxu3 %v861_v50  ;;  %v735_v37 = vld [vmem:[#allocation5 + $0x228] sm:$0xff] }
 0x1b1   : > { %1169 = vmatpush.msrb.mxu0 %v736_v51  ;;  %1189 = vmatpush.msrb.mxu1 %v864_v52  ;;  %v863_v38 = vld [vmem:[#allocation5 + $0x628] sm:$0xff] }
 0x1b2   : > { %1050 = vmatpush.msrb.mxu2 %v725_v57  ;;  %1070 = vmatpush.msrb.mxu3 %v853_v60  ;;  %v727_v39 = vld [vmem:[#allocation5 + $0x1e8] sm:$0xff] }
 0x1b3   : > { %1170 = vmatpush.msrb.mxu0 %v728_v61  ;;  %1190 = vmatpush.msrb.mxu1 %v856_v62  ;;  %v855_v40 = vld [vmem:[#allocation5 + $0x5e8] sm:$0xff]  ;;  %v793_v61 = vld [vmem:[#allocation5 + $0x3f8] sm:$0xff] }
 0x1b4   : > { %1051 = vmatpush.msrb.mxu2 %v717_v63  ;;  %1071 = vmatpush.msrb.mxu3 %v845_v0  ;;  %v719_v41 = vld [vmem:[#allocation5 + $0x1a8] sm:$0xff]  ;;  %v921_v62 = vld [vmem:[#allocation5 + $0x7f8] sm:$0xff] }
 0x1b5   : > { %1171 = vmatpush.msrb.mxu0 %v720_v2  ;;  %1191 = vmatpush.msrb.mxu1 %v848_v1  ;;  %v847_v42 = vld [vmem:[#allocation5 + $0x5a8] sm:$0xff]  ;;  %v785_v63 = vld [vmem:[#allocation5 + $0x3b8] sm:$0xff] }
 0x1b6   : > { %1052 = vmatpush.msrb.mxu2 %v709_v3  ;;  %1072 = vmatpush.msrb.mxu3 %v837_v4  ;;  %v711_v43 = vld [vmem:[#allocation5 + $0x168] sm:$0xff]  ;;  %v913_v0 = vld [vmem:[#allocation5 + $0x7b8] sm:$0xff] }
 0x1b7   : > { %1172 = vmatpush.msrb.mxu0 %v712_v58  ;;  %1192 = vmatpush.msrb.mxu1 %v840_v6  ;;  %v839_v44 = vld [vmem:[#allocation5 + $0x568] sm:$0xff]  ;;  %v777_v2 = vld [vmem:[#allocation5 + $0x378] sm:$0xff] }
 0x1b8   : > { %1053 = vmatpush.msrb.mxu2 %v701_v59  ;;  %1073 = vmatpush.msrb.mxu3 %v829_v7  ;;  %v703_v45 = vld [vmem:[#allocation5 + $0x128] sm:$0xff]  ;;  %v905_v1 = vld [vmem:[#allocation5 + $0x778] sm:$0xff] }
 0x1b9   : > { %1173 = vmatpush.msrb.mxu0 %v704_v5  ;;  %1193 = vmatpush.msrb.mxu1 %v832_v8  ;;  %v831_v46 = vld [vmem:[#allocation5 + $0x528] sm:$0xff]  ;;  %v769_v3 = vld [vmem:[#allocation5 + $0x338] sm:$0xff] }
 0x1ba   : > { %1054 = vmatpush.msrb.mxu2 %v693_v9  ;;  %1074 = vmatpush.msrb.mxu3 %v821_v10  ;;  %v695_v47 = vld [vmem:[#allocation5 + $0xe8] sm:$0xff]  ;;  %v897_v4 = vld [vmem:[#allocation5 + $0x738] sm:$0xff] }
 0x1bb   : > { %1174 = vmatpush.msrb.mxu0 %v696_v11  ;;  %1194 = vmatpush.msrb.mxu1 %v824_v55  ;;  %v823_v48 = vld [vmem:[#allocation5 + $0x4e8] sm:$0xff]  ;;  %v761_v58 = vld [vmem:[#allocation5 + $0x2f8] sm:$0xff] }
 0x1bc   : > { %1055 = vmatpush.msrb.mxu2 %v685_v56  ;;  %1075 = vmatpush.msrb.mxu3 %v813_v12  ;;  %v687_v49 = vld [vmem:[#allocation5 + $0xa8] sm:$0xff]  ;;  %v889_v6 = vld [vmem:[#allocation5 + $0x6f8] sm:$0xff] }
 0x1bd   : > { %1175 = vmatpush.msrb.mxu0 %v688_v13  ;;  %1195 = vmatpush.msrb.mxu1 %v816_v15  ;;  %v815_v50 = vld [vmem:[#allocation5 + $0x4a8] sm:$0xff]  ;;  %v753_v59 = vld [vmem:[#allocation5 + $0x2b8] sm:$0xff] }
 0x1be   : > { %1056 = vmatpush.msrb.mxu2 %v677_v16  ;;  %1076 = vmatpush.msrb.mxu3 %v805_v17  ;;  %v679_v51 = vld [vmem:[#allocation5 + $0x68] sm:$0xff]  ;;  %v881_v7 = vld [vmem:[#allocation5 + $0x6b8] sm:$0xff] }
 0x1bf   : > { %1176 = vmatpush.msrb.mxu0 %v680_v18  ;;  %1196 = vmatpush.msrb.mxu1 %v808_v19  ;;  %v807_v52 = vld [vmem:[#allocation5 + $0x468] sm:$0xff]  ;;  %v745_v5 = vld [vmem:[#allocation5 + $0x278] sm:$0xff] }
 0x1c0   : > { %1057 = vmatpush.msrb.mxu2 %v669_v21  ;;  %1077 = vmatpush.msrb.mxu3 %v797_v54  ;;  %v671_v57 = vld [vmem:[#allocation5 + $0x28] sm:$0xff]  ;;  %v873_v8 = vld [vmem:[#allocation5 + $0x678] sm:$0xff] }
 0x1c1   : > { %1177 = vmatpush.msrb.mxu0 %v672_v22  ;;  %1197 = vmatpush.msrb.mxu1 %v800_v23  ;;  %v799_v60 = vld [vmem:[#allocation5 + $0x428] sm:$0xff]  ;;  %v737_v9 = vld [vmem:[#allocation5 + $0x238] sm:$0xff] }
 0x1c2   : > { %1058 = vmatmul.f32.vlgmr.msrb.gmra.mxu2 %v1897_v20  ;;  %1078 = vmatmul.f32.vlgmr.msrb.gmra.mxu3 %v1899_v53  ;;  %v865_v10 = vld [vmem:[#allocation5 + $0x638] sm:$0xff] }
 0x1c3   : > { %1122 = vmatpush.msra.mxu2 %v791_v14  ;;  %1142 = vmatpush.msra.mxu3 %v919_v24  ;;  %v729_v11 = vld [vmem:[#allocation5 + $0x1f8] sm:$0xff] }
 0x1c4   : > { %1178 = vmatmul.f32.vlgmr.msrb.gmra.mxu0 %v1897_v20  ;;  %1198 = vmatmul.f32.vlgmr.msrb.gmra.mxu1 %v1899_v53  ;;  %v857_v55 = vld [vmem:[#allocation5 + $0x5f8] sm:$0xff] }
 0x1c5   : > { %1123 = vmatpush.msra.mxu2 %v783_v25  ;;  %1143 = vmatpush.msra.mxu3 %v911_v26  ;;  %v721_v56 = vld [vmem:[#allocation5 + $0x1b8] sm:$0xff] }
 0x1c6   : > { %v849_v12 = vld [vmem:[#allocation5 + $0x5b8] sm:$0xff] }
 0x1c7   : > { %1124 = vmatpush.msra.mxu2 %v775_v27  ;;  %1144 = vmatpush.msra.mxu3 %v903_v28  ;;  %v713_v13 = vld [vmem:[#allocation5 + $0x178] sm:$0xff] }
 0x1c8   : > { %v841_v15 = vld [vmem:[#allocation5 + $0x578] sm:$0xff] }
 0x1c9   : > { %1125 = vmatpush.msra.mxu2 %v767_v29  ;;  %1145 = vmatpush.msra.mxu3 %v895_v30  ;;  %v705_v16 = vld [vmem:[#allocation5 + $0x138] sm:$0xff] }
 0x1ca   : > { %v833_v17 = vld [vmem:[#allocation5 + $0x538] sm:$0xff] }
 0x1cb   : > { %1126 = vmatpush.msra.mxu2 %v759_v31  ;;  %1146 = vmatpush.msra.mxu3 %v887_v32  ;;  %v697_v18 = vld [vmem:[#allocation5 + $0xf8] sm:$0xff] }
 0x1cc   : > { %v825_v19 = vld [vmem:[#allocation5 + $0x4f8] sm:$0xff] }
 0x1cd   : > { %1127 = vmatpush.msra.mxu2 %v751_v33  ;;  %1147 = vmatpush.msra.mxu3 %v879_v34  ;;  %v689_v21 = vld [vmem:[#allocation5 + $0xb8] sm:$0xff] }
 0x1ce   : > { %v817_v54 = vld [vmem:[#allocation5 + $0x4b8] sm:$0xff] }
 0x1cf   : > { %1128 = vmatpush.msra.mxu2 %v743_v35  ;;  %1148 = vmatpush.msra.mxu3 %v871_v36  ;;  %v681_v22 = vld [vmem:[#allocation5 + $0x78] sm:$0xff] }
 0x1d0   : > { %v809_v23 = vld [vmem:[#allocation5 + $0x478] sm:$0xff] }
 0x1d1   : > { %1129 = vmatpush.msra.mxu2 %v735_v37  ;;  %1149 = vmatpush.msra.mxu3 %v863_v38  ;;  %v673_v14 = vld [vmem:[#allocation5 + $0x38] sm:$0xff] }
 0x1d2   : > { %v801_v24 = vld [vmem:[#allocation5 + $0x438] sm:$0xff] }
 0x1d3   : > { %1130 = vmatpush.msra.mxu2 %v727_v39  ;;  %1150 = vmatpush.msra.mxu3 %v855_v40 }
 0x1d5   : > { %1131 = vmatpush.msra.mxu2 %v719_v41  ;;  %1151 = vmatpush.msra.mxu3 %v847_v42 }
 0x1d7   : > { %1132 = vmatpush.msra.mxu2 %v711_v43  ;;  %1152 = vmatpush.msra.mxu3 %v839_v44 }
 0x1d9   : > { %1133 = vmatpush.msra.mxu2 %v703_v45  ;;  %1153 = vmatpush.msra.mxu3 %v831_v46 }
 0x1db   : > { %1134 = vmatpush.msra.mxu2 %v695_v47  ;;  %1154 = vmatpush.msra.mxu3 %v823_v48 }
 0x1dd   : > { %1135 = vmatpush.msra.mxu2 %v687_v49  ;;  %1155 = vmatpush.msra.mxu3 %v815_v50 }
 0x1df   : > { %1136 = vmatpush.msra.mxu2 %v679_v51  ;;  %1156 = vmatpush.msra.mxu3 %v807_v52 }
 0x1e1   : > { %1137 = vmatpush.msra.mxu2 %v671_v57  ;;  %1157 = vmatpush.msra.mxu3 %v799_v60 }
 0x1e2   : > { %1138 = vmatmul.f32.vlgmr.msra.gmra.mxu2 %v1897_v20  ;;  %1158 = vmatmul.f32.vlgmr.msra.gmra.mxu3 %v1899_v53 }
 0x1e3   : > { %1202 = vmatpush.msrb.mxu2 %v793_v61  ;;  %1222 = vmatpush.msrb.mxu3 %v921_v62 }
 0x1e5   : > { %1203 = vmatpush.msrb.mxu2 %v785_v63  ;;  %1223 = vmatpush.msrb.mxu3 %v913_v0 }
 0x1e7   : > { %1204 = vmatpush.msrb.mxu2 %v777_v2  ;;  %1224 = vmatpush.msrb.mxu3 %v905_v1 }
 0x1e9   : > { %1205 = vmatpush.msrb.mxu2 %v769_v3  ;;  %1225 = vmatpush.msrb.mxu3 %v897_v4 }
 0x1eb   : > { %1206 = vmatpush.msrb.mxu2 %v761_v58  ;;  %1226 = vmatpush.msrb.mxu3 %v889_v6 }
 0x1ed   : > { %1207 = vmatpush.msrb.mxu2 %v753_v59  ;;  %1227 = vmatpush.msrb.mxu3 %v881_v7 }
 0x1ef   : > { %1208 = vmatpush.msrb.mxu2 %v745_v5  ;;  %1228 = vmatpush.msrb.mxu3 %v873_v8 }
 0x1f1   : > { %1209 = vmatpush.msrb.mxu2 %v737_v9  ;;  %1229 = vmatpush.msrb.mxu3 %v865_v10 }
 0x1f3   : > { %1210 = vmatpush.msrb.mxu2 %v729_v11  ;;  %1230 = vmatpush.msrb.mxu3 %v857_v55 }
 0x1f5   : > { %1211 = vmatpush.msrb.mxu2 %v721_v56  ;;  %1231 = vmatpush.msrb.mxu3 %v849_v12 }
 0x1f7   : > { %1212 = vmatpush.msrb.mxu2 %v713_v13  ;;  %1232 = vmatpush.msrb.mxu3 %v841_v15 }
 0x1f9   : > { %1213 = vmatpush.msrb.mxu2 %v705_v16  ;;  %1233 = vmatpush.msrb.mxu3 %v833_v17 }
 0x1fb   : > { %1214 = vmatpush.msrb.mxu2 %v697_v18  ;;  %1234 = vmatpush.msrb.mxu3 %v825_v19 }
 0x1fd   : > { %1215 = vmatpush.msrb.mxu2 %v689_v21  ;;  %1235 = vmatpush.msrb.mxu3 %v817_v54 }
 0x1ff   : > { %1216 = vmatpush.msrb.mxu2 %v681_v22  ;;  %1236 = vmatpush.msrb.mxu3 %v809_v23 }
 0x201   : > { %1217 = vmatpush.msrb.mxu2 %v673_v14  ;;  %1237 = vmatpush.msrb.mxu3 %v801_v24 }
 0x202   : > { %1218 = vmatmul.f32.vlgmr.msrb.gmra.mxu2 %v1897_v20  ;;  %1238 = vmatmul.f32.vlgmr.msrb.gmra.mxu3 %v1899_v53 }
 0x21b   : > { %v1019_v25 = vpop.f32.mrf.mxu0 }
 0x21c   : > { %v1039_v26 = vpop.f32.mrf.mxu1 }
 0x21d   : > { %v1040_v27 = vadd.f32 %v1039_v26, %v1019_v25 }
 0x21f   : > { %1244 = vst [vmem:[%s1918_s26 + $0x10] sm:$0xff] %v1040_v27 }
 0x221   : > { %v939_v28 = vpop.f32.mrf.mxu2 }
 0x222   : > { %v959_v29 = vpop.f32.mrf.mxu3 }
 0x223   : > { %v960_v30 = vadd.f32 %v959_v29, %v939_v28 }
 0x225   : > { %1242 = vst [vmem:[%s1918_s26] sm:$0xff] %v960_v30 }
 0x227   : > { %v1099_v20 = vpop.f32.mrf.mxu0  ;;  %v1119_v31 = vpop.f32.mrf.mxu1 }
 0x228   : > { %v1120_v53 = vadd.f32 %v1119_v31, %v1099_v20 }
 0x22a   : > { %1246 = vst [vmem:[%s1918_s26 + $0x20] sm:$0xff] %v1120_v53 }
 0x22b   : > { %v979_v32 = vpop.f32.mrf.mxu2  ;;  %v999_v33 = vpop.f32.mrf.mxu3 }
 0x22c   : > { %v1000_v34 = vadd.f32 %v999_v33, %v979_v32 }
 0x22e   : > { %1243 = vst [vmem:[%s1918_s26 + $0x8] sm:$0xff] %v1000_v34 }
 0x241   : > { %v1179_v35 = vpop.f32.mrf.mxu0  ;;  %v1199_v36 = vpop.f32.mrf.mxu1 }
 0x242   : > { %v1200_v37 = vadd.f32 %v1199_v36, %v1179_v35 }
 0x244   : > { %1248 = vst [vmem:[%s1918_s26 + $0x30] sm:$0xff] %v1200_v37 }
 0x245   : > { %v1059_v38 = vpop.f32.mrf.mxu2  ;;  %v1079_v39 = vpop.f32.mrf.mxu3 }
 0x246   : > { %v1080_v40 = vadd.f32 %v1079_v39, %v1059_v38 }
 0x248   : > { %1245 = vst [vmem:[%s1918_s26 + $0x18] sm:$0xff] %v1080_v40 }
 0x265   : > { %v1139_v41 = vpop.f32.mrf.mxu2  ;;  %v1159_v42 = vpop.f32.mrf.mxu3 }
 0x266   : > { %v1160_v43 = vadd.f32 %v1159_v42, %v1139_v41 }
 0x268   : > { %1247 = vst [vmem:[%s1918_s26 + $0x28] sm:$0xff] %v1160_v43 }
 0x285   : > { %v1219_v44 = vpop.f32.mrf.mxu2  ;;  %v1239_v45 = vpop.f32.mrf.mxu3 }
 0x286   : > { %v1240_v46 = vadd.f32 %v1239_v45, %v1219_v44 }
 0x288   : > { %1249 = vst [vmem:[%s1918_s26 + $0x38] sm:$0xff] %v1240_v46 }
 0x289   : > { %1586 = shalt.err (!%p1583_p10)
}
 0x28a   : > { %1440 = dma.vmem_to_hbm [thread:$0]  (%p1744_p7), %s1265_s14, 1024, %s1267_s6, %s1251_s16  }
 0x28b PF: > { %s1278_s11 = sand.u32 1, %s1617_s24   ;;  %p1980_p12 = scmp.ge.s32.totalorder %s1629_s27, 2 }
 0x28c   : > { %s1279_s22 = scalar_lea.sflag [#allocation4], %s1278_s11 }
 0x28d   : > { %p1451_p13 = pnand %p1980_p12, %p1712_p6 }
 0x28f   : > { %p1452_p0 = pneg %p1451_p13 }
 0x291   : > { %1612 = dma.done.wait (%p1452_p0), %s1279_s22, 1024  }
 0x292   : > { %1614 = vsyncadd (%p1452_p0), %s1279_s22, 4294966272  ;;  %s1981_s29 = sld [smem:[#allocation11_spill]]  ;;  %p21_p3 = scmp.ge.s32.totalorder %s1730_s15, 4  }
 0x293   : > { %s1982_s26 = sld [smem:[#allocation12_spill]]  ;;  %s1983_s24 = smov %s1621_s25 }
 0x294   : > { %s1985_s27 = smov %s1730_s15  ;;  %23 = sbr.rel (!%p21_p3) target bundleno = 8 (0x8), region = 97 }
 0x298   : > { %s1984_s25 = smov %s1981_s29 }
 0x299   :  { %1285 = vsyncpa [#allocation3], 1 }
 0x29a   :  { %1287 = vsyncpa [#allocation3 + $0x1], 1 }
 0x29b   :  { %1288 = vsyncpa [#allocation6], 1 }
 0x29c   :  { %1289 = vsyncpa [#allocation4], 1 }
 0x29d   :  { %1291 = vsyncpa [#allocation4 + $0x1], 1 }

</bundles_post_ra>
